<compile_context>
chip_gen: v5e
topology: v5e:2x2
jax: 0.10.0
libtpu: 0.0.40
codegen_flags: <defaults>
</compile_context>

<pallas_src>
import functools
import math

import jax
import jax.numpy as jnp
from jax import lax
from jax.experimental import pallas as pl
from jax.experimental.pallas import tpu as pltpu


# ----------------------------------------------------------------------------
# Fused kernel: all-head QKV projection + online-softmax attention + output
# projection (+bias), flash-style over Sy tiles.
# ----------------------------------------------------------------------------
def _fused_cross_attn_kernel(
    x_ref, y_ref, wq_ref, wk_ref, wv_ref, wo_ref, bo_ref, o_ref,
    q_scr, k_scr, v_scr, m_scr, l_scr, acc_scr,
    *, num_heads, head_dim, approx_recip, compute_dtype,
):
    # x_ref  : (1, Ts,  E)      current (batch, Sx-tile) slice of x
    # y_ref  : (1, Tk,  E)      current (batch, Sy-tile) slice of y
    # wq/wk/wv_ref : (E, A)     projection weights (A = all_head_size)
    # wo_ref : (A, hidden)      output projection weight
    # bo_ref : (1, hidden)      output projection bias (f32)
    # o_ref  : (1, Ts, hidden)  final projected output (lane-dense last dim)
    # scratch: q (Ts,A) cdt | k,v (Tk,A) cdt | m,l (Ts,H) f32 | acc (Ts,A) f32
    sy_i = pl.program_id(2)

    @pl.when(sy_i == 0)
    def _init():
        x = x_ref[0]                                           # (Ts, E)
        scale = 1.0 / math.sqrt(float(head_dim))
        # Scale folded into q (cheaper than scaling every (Ts, Tk) score tile).
        q_scr[...] = (jnp.dot(x, wq_ref[...],
                              preferred_element_type=jnp.float32)
                      * scale).astype(compute_dtype)           # (Ts, A)
        m_scr[...] = jnp.full(m_scr.shape, -jnp.inf, jnp.float32)
        l_scr[...] = jnp.zeros(l_scr.shape, jnp.float32)
        acc_scr[...] = jnp.zeros(acc_scr.shape, jnp.float32)

    # K/V for the current Sy tile, all heads at once (lane-dense N = A).
    y = y_ref[0]                                               # (Tk, E)
    k_scr[...] = jnp.dot(y, wk_ref[...],
                         preferred_element_type=jnp.float32).astype(compute_dtype)
    v_scr[...] = jnp.dot(y, wv_ref[...],
                         preferred_element_type=jnp.float32).astype(compute_dtype)

    # Per-head online softmax.  Static head loop, but every operand is a fresh
    # slice of a VMEM scratch ref, so live ranges stay bounded per iteration.
    for h in range(num_heads):
        lo = h * head_dim
        hi = lo + head_dim
        qh = q_scr[:, lo:hi]                                   # (Ts, d)
        kh = k_scr[:, lo:hi]                                   # (Tk, d)
        vh = v_scr[:, lo:hi]                                   # (Tk, d)

        # scores = qh @ kh^T  (contract head_dim, no explicit transpose).
        s = lax.dot_general(qh, kh, (((1,), (1,)), ((), ())),
                            preferred_element_type=jnp.float32)  # (Ts, Tk) f32

        # Online softmax update -- all softmax math kept in f32 (v5e guardrail).
        m_prev = m_scr[:, h:h + 1]                             # (Ts, 1)
        m_cur = jnp.maximum(m_prev, jnp.max(s, axis=-1, keepdims=True))
        alpha = jnp.exp(m_prev - m_cur)                        # (Ts, 1)
        p = jnp.exp(s - m_cur)                                 # (Ts, Tk) f32
        l_scr[:, h:h + 1] = alpha * l_scr[:, h:h + 1] + jnp.sum(
            p, axis=-1, keepdims=True)
        acc_scr[:, lo:hi] = alpha * acc_scr[:, lo:hi] + jnp.dot(
            p.astype(compute_dtype), vh, preferred_element_type=jnp.float32)
        m_scr[:, h:h + 1] = m_cur

    @pl.when(sy_i == pl.num_programs(2) - 1)
    def _finalize():
        # Per-head normalization of the accumulator (EUP reciprocal).
        for h in range(num_heads):
            lo = h * head_dim
            hi = lo + head_dim
            inv_l = pl.reciprocal(l_scr[:, h:h + 1], approx=approx_recip)
            acc_scr[:, lo:hi] = acc_scr[:, lo:hi] * inv_l
        # Fused output projection with full contraction depth K = A, then bias.
        out = jnp.dot(acc_scr[...].astype(compute_dtype), wo_ref[...],
                      preferred_element_type=jnp.float32)      # (Ts, hidden)
        o_ref[0] = (out + bo_ref[...]).astype(o_ref.dtype)


# ----------------------------------------------------------------------------
# Wrapper
# ----------------------------------------------------------------------------
def _vmem_capacity_bytes():
    try:
        info = pltpu.get_tpu_info()
        for attr in ("vmem_capacity_bytes", "vmem_size_bytes", "vmem_bytes"):
            v = getattr(info, attr, None)
            if v:
                return int(v)
    except Exception:
        pass
    return 128 * 1024 * 1024


def multi_cross_attention_fused(
    x, y, wq_t, wk_t, wv_t, wo_t, bo, *, num_heads,
    block_sx=None, block_sy=None, approx_recip=True,
    compute_dtype=jnp.bfloat16,
):
    """Fused cross-attention + output projection.

    x: (B, Sx, E), y: (B, Sy, E), wq/wk/wv: (E, A), wo: (A, hidden),
    bo: (hidden,).  Returns (B, Sx, hidden) float32.
    """
    B, Sx, E = x.shape
    By, Sy, Ey = y.shape
    assert Ey == E and By == B
    A = wq_t.shape[1]
    hidden = wo_t.shape[1]
    assert A % num_heads == 0
    head_dim = A // num_heads

    # Per-generation VMEM budget: v7x has 64 MiB physical, v5e/v6e 128 MiB.
    vmem_cap = _vmem_capacity_bytes()
    small_vmem = vmem_cap <= 64 * 1024 * 1024
    if block_sx is None:
        cap = 128 if small_vmem else 512
        block_sx = Sx if Sx <= cap else cap
        # Keep >= 2 parallel grid points so both v7x TensorCores get work.
        while (B * (Sx // block_sx) < 2 and block_sx > 8
               and Sx % (block_sx // 2) == 0 and (block_sx // 2) % 8 == 0):
            block_sx //= 2
    if block_sy is None:
        cap = 256 if small_vmem else 512
        block_sy = Sy if Sy <= cap else cap
    assert Sx % block_sx == 0 and (block_sx == Sx or block_sx % 8 == 0)
    assert Sy % block_sy == 0 and (block_sy == Sy or block_sy % 8 == 0)
    vmem_limit = (48 if small_vmem else 100) * 1024 * 1024

    # Cast activations and ALL weights to the MXU compute dtype (bf16 default;
    # accumulation stays f32 via preferred_element_type). Bias stays f32.
    x_c = x.astype(compute_dtype)
    y_c = y.astype(compute_dtype)
    wq_c = wq_t.astype(compute_dtype)
    wk_c = wk_t.astype(compute_dtype)
    wv_c = wv_t.astype(compute_dtype)
    wo_c = wo_t.astype(compute_dtype)
    bo2 = bo.reshape(1, hidden).astype(jnp.float32)

    kernel = functools.partial(
        _fused_cross_attn_kernel,
        num_heads=num_heads, head_dim=head_dim,
        approx_recip=approx_recip, compute_dtype=compute_dtype,
    )
    grid = (B, Sx // block_sx, Sy // block_sy)

    def build(single_buffer_weights):
        # Weights/bias have a constant block index: single-buffer them (no
        # point double-buffering blocks that are DMA'd exactly once).
        wkw = {"pipeline_mode": pl.Buffered(1)} if single_buffer_weights else {}
        in_specs = [
            pl.BlockSpec((1, block_sx, E), lambda b, s, t: (b, s, 0)),
            pl.BlockSpec((1, block_sy, E), lambda b, s, t: (b, t, 0)),
            pl.BlockSpec((E, A), lambda b, s, t: (0, 0), **wkw),
            pl.BlockSpec((E, A), lambda b, s, t: (0, 0), **wkw),
            pl.BlockSpec((E, A), lambda b, s, t: (0, 0), **wkw),
            pl.BlockSpec((A, hidden), lambda b, s, t: (0, 0), **wkw),
            pl.BlockSpec((1, hidden), lambda b, s, t: (0, 0), **wkw),
        ]
        out_specs = pl.BlockSpec((1, block_sx, hidden), lambda b, s, t: (b, s, 0))
        scratch_shapes = [
            pltpu.VMEM((block_sx, A), compute_dtype),          # q (cached)
            pltpu.VMEM((block_sy, A), compute_dtype),          # k (per Sy tile)
            pltpu.VMEM((block_sy, A), compute_dtype),          # v (per Sy tile)
            pltpu.VMEM((block_sx, num_heads), jnp.float32),    # m (running max)
            pltpu.VMEM((block_sx, num_heads), jnp.float32),    # l (running sum)
            pltpu.VMEM((block_sx, A), jnp.float32),            # acc
        ]
        return pl.pallas_call(
            kernel,
            out_shape=jax.ShapeDtypeStruct((B, Sx, hidden), jnp.float32),
            grid=grid,
            in_specs=in_specs,
            out_specs=out_specs,
            scratch_shapes=scratch_shapes,
            compiler_params=pltpu.CompilerParams(
                dimension_semantics=("parallel", "parallel", "arbitrary"),
                vmem_limit_bytes=vmem_limit,
            ),
        )

    args = (x_c, y_c, wq_c, wk_c, wv_c, wo_c, bo2)
    try:
        return build(True)(*args)
    except Exception:
        # Fallback for JAX versions without BlockSpec pipeline_mode support.
        return build(False)(*args)


# ----------------------------------------------------------------------------
# Full module forward
# ----------------------------------------------------------------------------
def multi_cross_attention_forward(x, y, params, num_heads, **kw):
    """Replicates Multi_CrossAttention.forward.

    x: (B, Sx, hidden), y: (B, Sy, hidden)
    returns (i_feature: (B, Sx-1, hidden), icls_token: (B, 50))
    """
    out = multi_cross_attention_fused(
        x, y,
        params["wq_t"], params["wk_t"], params["wv_t"],
        params["wo_t"], params["bo"],
        num_heads=num_heads, **kw,
    )                                            # (B, Sx, hidden) f32

    i_feature = out[:, 1:, :]
    icls_token = out[:, 0, :]
    # CLS head: (B, hidden) x (hidden, 50) -- far below Pallas launch cost, so
    # leave it to XLA (it fuses with the slice).
    icls_token = icls_token @ params["wh_t"] + params["bh"]
    return i_feature, icls_token


def init_params(key, hidden_size, all_head_size, head_dim_out=50):
    """Deterministic uniform init (PyTorch-nn.Linear-style bounds)."""
    ks = jax.random.split(key, 8)

    def lin_w(k, fan_in, fan_out):
        bound = 1.0 / math.sqrt(fan_in)
        # stored already transposed: (fan_in, fan_out) so y = x @ w
        return jax.random.uniform(
            k, (fan_in, fan_out), jnp.float32, minval=-bound, maxval=bound)

    def lin_b(k, fan_in, fan_out):
        bound = 1.0 / math.sqrt(fan_in)
        return jax.random.uniform(
            k, (fan_out,), jnp.float32, minval=-bound, maxval=bound)

    return {
        "wq_t": lin_w(ks[0], hidden_size, all_head_size),
        "wk_t": lin_w(ks[1], hidden_size, all_head_size),
        "wv_t": lin_w(ks[2], hidden_size, all_head_size),
        "wo_t": lin_w(ks[3], all_head_size, hidden_size),
        "bo": lin_b(ks[4], all_head_size, hidden_size),
        # synthetic weights for the `head = nn.Linear(...)` created in forward()
        "wh_t": lin_w(ks[5], hidden_size, head_dim_out),
        "bh": lin_b(ks[6], hidden_size, head_dim_out),
    }


if __name__ == "__main__":
    # Small shapes consistent with the module.
    B, Sx, Sy = 2, 8, 8
    hidden_size = 32
    all_head_size = 32
    head_num = 4

    key = jax.random.PRNGKey(0)
    kx, ky, kp = jax.random.split(key, 3)
    x = jax.random.normal(kx, (B, Sx, hidden_size), jnp.float32)
    y = jax.random.normal(ky, (B, Sy, hidden_size), jnp.float32)
    params = init_params(kp, hidden_size, all_head_size)

    # Pure-JAX reference.
    def ref_forward(x, y, p, H):
        q = x @ p["wq_t"]
        k = y @ p["wk_t"]
        v = y @ p["wv_t"]
        Bb, S, E = q.shape
        d = E // H

        def split(t):
            return jnp.transpose(t.reshape(Bb, -1, H, d), (0, 2, 1, 3))

        qs, ks, vs = split(q), split(k), split(v)
        s = jnp.einsum("bhqd,bhkd->bhqk", qs, ks) / math.sqrt(d)
        a = jax.nn.softmax(s, axis=-1)
        o = jnp.einsum("bhqk,bhkd->bhqd", a, vs)
        o = jnp.transpose(o, (0, 2, 1, 3)).reshape(Bb, S, E)
        out = o @ p["wo_t"] + p["bo"]
        return out[:, 1:, :], out[:, 0, :] @ p["wh_t"] + p["bh"]

    ref_if, ref_cls = ref_forward(x, y, params, head_num)

    # 1) Default production path: bf16 MXU compute, approx reciprocal.
    i_feature, icls_token = multi_cross_attention_forward(x, y, params, head_num)
    jax.block_until_ready((i_feature, icls_token))
    assert i_feature.shape == (B, Sx - 1, hidden_size)
    assert icls_token.shape == (B, 50)
    assert jnp.allclose(i_feature, ref_if, atol=1e-1, rtol=1e-1)
    assert jnp.allclose(icls_token, ref_cls, atol=1e-1, rtol=1e-1)

    # 2) f32 exact-math path: tight check that the fused online-softmax kernel
    #    reproduces the reference.
    i_f32, cls_f32 = multi_cross_attention_forward(
        x, y, params, head_num,
        compute_dtype=jnp.float32, approx_recip=False)
    jax.block_until_ready((i_f32, cls_f32))
    assert jnp.allclose(i_f32, ref_if, atol=1e-4, rtol=1e-4)
    assert jnp.allclose(cls_f32, ref_cls, atol=1e-4, rtol=1e-4)

    print("KERNEL_OK")
</pallas_src>

<mosaic_0001>
module attributes {stable_mosaic.version = 11 : i64} {
  func.func @_fused_cross_attn_kernel(%arg0: i32, %arg1: i32, %arg2: i32, %arg3: memref<1x8x32xbf16, #tpu.memory_space<vmem>>, %arg4: memref<1x8x32xbf16, #tpu.memory_space<vmem>>, %arg5: memref<32x32xbf16, #tpu.memory_space<vmem>>, %arg6: memref<32x32xbf16, #tpu.memory_space<vmem>>, %arg7: memref<32x32xbf16, #tpu.memory_space<vmem>>, %arg8: memref<32x32xbf16, #tpu.memory_space<vmem>>, %arg9: memref<1x32xf32, #tpu.memory_space<vmem>>, %arg10: memref<1x8x32xf32, #tpu.memory_space<vmem>>, %arg11: memref<8x32xbf16, #tpu.memory_space<vmem>>, %arg12: memref<8x32xbf16, #tpu.memory_space<vmem>>, %arg13: memref<8x32xbf16, #tpu.memory_space<vmem>>, %arg14: memref<8x4xf32, #tpu.memory_space<vmem>>, %arg15: memref<8x4xf32, #tpu.memory_space<vmem>>, %arg16: memref<8x32xf32, #tpu.memory_space<vmem>>) attributes {dimension_semantics = [#tpu.dimension_semantics<parallel>, #tpu.dimension_semantics<parallel>, #tpu.dimension_semantics<arbitrary>], iteration_bounds = array<i64: 2, 1, 1>, scalar_prefetch = 0 : i64, scratch_operands = 6 : i64, tpu.core_type = #tpu.core_type<tc>, window_params = [{transform_indices = @transform_0, window_bounds = array<i64: 1, 8, 32>}, {transform_indices = @transform_1, window_bounds = array<i64: 1, 8, 32>}, {pipeline_mode = #tpu.pipeline_mode<synchronous>, transform_indices = @transform_2, window_bounds = array<i64: 32, 32>}, {pipeline_mode = #tpu.pipeline_mode<synchronous>, transform_indices = @transform_3, window_bounds = array<i64: 32, 32>}, {pipeline_mode = #tpu.pipeline_mode<synchronous>, transform_indices = @transform_4, window_bounds = array<i64: 32, 32>}, {pipeline_mode = #tpu.pipeline_mode<synchronous>, transform_indices = @transform_5, window_bounds = array<i64: 32, 32>}, {pipeline_mode = #tpu.pipeline_mode<synchronous>, transform_indices = @transform_6, window_bounds = array<i64: 1, 32>}, {transform_indices = @transform_7, window_bounds = array<i64: 1, 8, 32>}]} {
    %c0_i32 = arith.constant 0 : i32
    %0 = arith.cmpi eq, %arg2, %c0_i32 : i32
    %1 = arith.extui %0 : i1 to i32
    %c0_i32_0 = arith.constant 0 : i32
    %2 = arith.cmpi ne, %1, %c0_i32_0 : i32
    scf.if %2 {
      %c0_96 = arith.constant 0 : index
      %c0_97 = arith.constant 0 : index
      %c0_98 = arith.constant 0 : index
      %124 = vector.load %arg3[%c0_96, %c0_97, %c0_98] : memref<1x8x32xbf16, #tpu.memory_space<vmem>>, vector<1x8x32xbf16>
      %125 = vector.shape_cast %124 : vector<1x8x32xbf16> to vector<8x32xbf16>
      %c0_99 = arith.constant 0 : index
      %c0_100 = arith.constant 0 : index
      %126 = vector.load %arg5[%c0_99, %c0_100] : memref<32x32xbf16, #tpu.memory_space<vmem>>, vector<32x32xbf16>
      %cst_101 = arith.constant dense<0.000000e+00> : vector<8x32xf32>
      %127 = tpu.matmul %125, %126, %cst_101 {dimension_numbers = #tpu.dot_dimension_numbers<[1], [0], [0], [1], [0, 0, 1, 1], [], []>} : vector<8x32xbf16>, vector<32x32xbf16>, vector<8x32xf32> -> vector<8x32xf32>
      %cst_102 = arith.constant 0.353553385 : f32
      %128 = vector.broadcast %cst_102 : f32 to vector<8x32xf32>
      %129 = arith.mulf %127, %128 : vector<8x32xf32>
      %130 = arith.truncf %129 : vector<8x32xf32> to vector<8x32xbf16>
      %c0_103 = arith.constant 0 : index
      %c0_104 = arith.constant 0 : index
      %131 = vector.load %arg11[%c0_103, %c0_104] : memref<8x32xbf16, #tpu.memory_space<vmem>>, vector<8x32xbf16>
      tpu.vector_store %arg11[%c0_103, %c0_104], %130 {strides = array<i32>} : memref<8x32xbf16, #tpu.memory_space<vmem>>, vector<8x32xbf16>,
      %cst_105 = arith.constant 0xFF800000 : f32
      %132 = vector.broadcast %cst_105 : f32 to vector<8x4xf32>
      %c0_106 = arith.constant 0 : index
      %c0_107 = arith.constant 0 : index
      %133 = vector.load %arg14[%c0_106, %c0_107] : memref<8x4xf32, #tpu.memory_space<vmem>>, vector<8x4xf32>
      tpu.vector_store %arg14[%c0_106, %c0_107], %132 {strides = array<i32>} : memref<8x4xf32, #tpu.memory_space<vmem>>, vector<8x4xf32>,
      %cst_108 = arith.constant 0.000000e+00 : f32
      %134 = vector.broadcast %cst_108 : f32 to vector<8x4xf32>
      %c0_109 = arith.constant 0 : index
      %c0_110 = arith.constant 0 : index
      %135 = vector.load %arg15[%c0_109, %c0_110] : memref<8x4xf32, #tpu.memory_space<vmem>>, vector<8x4xf32>
      tpu.vector_store %arg15[%c0_109, %c0_110], %134 {strides = array<i32>} : memref<8x4xf32, #tpu.memory_space<vmem>>, vector<8x4xf32>,
      %cst_111 = arith.constant 0.000000e+00 : f32
      %136 = vector.broadcast %cst_111 : f32 to vector<8x32xf32>
      %c0_112 = arith.constant 0 : index
      %c0_113 = arith.constant 0 : index
      %137 = vector.load %arg16[%c0_112, %c0_113] : memref<8x32xf32, #tpu.memory_space<vmem>>, vector<8x32xf32>
      tpu.vector_store %arg16[%c0_112, %c0_113], %136 {strides = array<i32>} : memref<8x32xf32, #tpu.memory_space<vmem>>, vector<8x32xf32>,
    } else {
    }
    %c0 = arith.constant 0 : index
    %c0_1 = arith.constant 0 : index
    %c0_2 = arith.constant 0 : index
    %3 = vector.load %arg4[%c0, %c0_1, %c0_2] : memref<1x8x32xbf16, #tpu.memory_space<vmem>>, vector<1x8x32xbf16>
    %4 = vector.shape_cast %3 : vector<1x8x32xbf16> to vector<8x32xbf16>
    %c0_3 = arith.constant 0 : index
    %c0_4 = arith.constant 0 : index
    %5 = vector.load %arg6[%c0_3, %c0_4] : memref<32x32xbf16, #tpu.memory_space<vmem>>, vector<32x32xbf16>
    %cst = arith.constant dense<0.000000e+00> : vector<8x32xf32>
    %6 = tpu.matmul %4, %5, %cst {dimension_numbers = #tpu.dot_dimension_numbers<[1], [0], [0], [1], [0, 0, 1, 1], [], []>} : vector<8x32xbf16>, vector<32x32xbf16>, vector<8x32xf32> -> vector<8x32xf32>
    %7 = arith.truncf %6 : vector<8x32xf32> to vector<8x32xbf16>
    %c0_5 = arith.constant 0 : index
    %c0_6 = arith.constant 0 : index
    %8 = vector.load %arg12[%c0_5, %c0_6] : memref<8x32xbf16, #tpu.memory_space<vmem>>, vector<8x32xbf16>
    tpu.vector_store %arg12[%c0_5, %c0_6], %7 {strides = array<i32>} : memref<8x32xbf16, #tpu.memory_space<vmem>>, vector<8x32xbf16>,
    %c0_7 = arith.constant 0 : index
    %c0_8 = arith.constant 0 : index
    %9 = vector.load %arg7[%c0_7, %c0_8] : memref<32x32xbf16, #tpu.memory_space<vmem>>, vector<32x32xbf16>
    %cst_9 = arith.constant dense<0.000000e+00> : vector<8x32xf32>
    %10 = tpu.matmul %4, %9, %cst_9 {dimension_numbers = #tpu.dot_dimension_numbers<[1], [0], [0], [1], [0, 0, 1, 1], [], []>} : vector<8x32xbf16>, vector<32x32xbf16>, vector<8x32xf32> -> vector<8x32xf32>
    %11 = arith.truncf %10 : vector<8x32xf32> to vector<8x32xbf16>
    %c0_10 = arith.constant 0 : index
    %c0_11 = arith.constant 0 : index
    %12 = vector.load %arg13[%c0_10, %c0_11] : memref<8x32xbf16, #tpu.memory_space<vmem>>, vector<8x32xbf16>
    tpu.vector_store %arg13[%c0_10, %c0_11], %11 {strides = array<i32>} : memref<8x32xbf16, #tpu.memory_space<vmem>>, vector<8x32xbf16>,
    %c0_12 = arith.constant 0 : index
    %c0_13 = arith.constant 0 : index
    %13 = vector.load %arg11[%c0_12, %c0_13] : memref<8x32xbf16, #tpu.memory_space<vmem>>, vector<8x8xbf16>
    %c0_14 = arith.constant 0 : index
    %c0_15 = arith.constant 0 : index
    %14 = vector.load %arg12[%c0_14, %c0_15] : memref<8x32xbf16, #tpu.memory_space<vmem>>, vector<8x8xbf16>
    %c0_16 = arith.constant 0 : index
    %c0_17 = arith.constant 0 : index
    %15 = vector.load %arg13[%c0_16, %c0_17] : memref<8x32xbf16, #tpu.memory_space<vmem>>, vector<8x8xbf16>
    %cst_18 = arith.constant dense<0.000000e+00> : vector<8x8xf32>
    %16 = tpu.matmul %13, %14, %cst_18 {dimension_numbers = #tpu.dot_dimension_numbers<[1], [1], [0], [0], [0, 0, 1, 0], [], []>} : vector<8x8xbf16>, vector<8x8xbf16>, vector<8x8xf32> -> vector<8x8xf32>
    %c0_19 = arith.constant 0 : index
    %c0_20 = arith.constant 0 : index
    %17 = vector.load %arg14[%c0_19, %c0_20] : memref<8x4xf32, #tpu.memory_space<vmem>>, vector<8x1xf32>
    %cst_21 = arith.constant dense<0xFF800000> : vector<8xf32>
    %18 = vector.multi_reduction <maximumf>, %16, %cst_21 [1] : vector<8x8xf32> to vector<8xf32>
    %19 = vector.shape_cast %18 : vector<8xf32> to vector<8x1xf32>
    %20 = arith.maximumf %17, %19 : vector<8x1xf32>
    %21 = arith.subf %17, %20 : vector<8x1xf32>
    %22 = math.exp %21 : vector<8x1xf32>
    %23 = vector.broadcast %20 : vector<8x1xf32> to vector<8x8xf32>
    %24 = arith.subf %16, %23 : vector<8x8xf32>
    %25 = math.exp %24 : vector<8x8xf32>
    %c0_22 = arith.constant 0 : index
    %c0_23 = arith.constant 0 : index
    %26 = vector.load %arg15[%c0_22, %c0_23] : memref<8x4xf32, #tpu.memory_space<vmem>>, vector<8x1xf32>
    %27 = arith.mulf %22, %26 : vector<8x1xf32>
    %cst_24 = arith.constant dense<0.000000e+00> : vector<8xf32>
    %28 = vector.multi_reduction <add>, %25, %cst_24 [1] : vector<8x8xf32> to vector<8xf32>
    %29 = vector.shape_cast %28 : vector<8xf32> to vector<8x1xf32>
    %30 = arith.addf %27, %29 : vector<8x1xf32>
    %c0_25 = arith.constant 0 : index
    %c0_26 = arith.constant 0 : index
    %31 = vector.load %arg15[%c0_25, %c0_26] : memref<8x4xf32, #tpu.memory_space<vmem>>, vector<8x1xf32>
    tpu.vector_store %arg15[%c0_25, %c0_26], %30 {strides = array<i32>} : memref<8x4xf32, #tpu.memory_space<vmem>>, vector<8x1xf32>,
    %c0_27 = arith.constant 0 : index
    %c0_28 = arith.constant 0 : index
    %32 = vector.load %arg16[%c0_27, %c0_28] : memref<8x32xf32, #tpu.memory_space<vmem>>, vector<8x8xf32>
    %33 = vector.broadcast %22 : vector<8x1xf32> to vector<8x8xf32>
    %34 = arith.mulf %33, %32 : vector<8x8xf32>
    %35 = arith.truncf %25 : vector<8x8xf32> to vector<8x8xbf16>
    %cst_29 = arith.constant dense<0.000000e+00> : vector<8x8xf32>
    %36 = tpu.matmul %35, %15, %cst_29 {dimension_numbers = #tpu.dot_dimension_numbers<[1], [0], [0], [1], [0, 0, 1, 1], [], []>} : vector<8x8xbf16>, vector<8x8xbf16>, vector<8x8xf32> -> vector<8x8xf32>
    %37 = arith.addf %34, %36 : vector<8x8xf32>
    %c0_30 = arith.constant 0 : index
    %c0_31 = arith.constant 0 : index
    %38 = vector.load %arg16[%c0_30, %c0_31] : memref<8x32xf32, #tpu.memory_space<vmem>>, vector<8x8xf32>
    tpu.vector_store %arg16[%c0_30, %c0_31], %37 {strides = array<i32>} : memref<8x32xf32, #tpu.memory_space<vmem>>, vector<8x8xf32>,
    %c0_32 = arith.constant 0 : index
    %c0_33 = arith.constant 0 : index
    %39 = vector.load %arg14[%c0_32, %c0_33] : memref<8x4xf32, #tpu.memory_space<vmem>>, vector<8x1xf32>
    tpu.vector_store %arg14[%c0_32, %c0_33], %20 {strides = array<i32>} : memref<8x4xf32, #tpu.memory_space<vmem>>, vector<8x1xf32>,
    %c0_34 = arith.constant 0 : index
    %c8 = arith.constant 8 : index
    %40 = vector.load %arg11[%c0_34, %c8] : memref<8x32xbf16, #tpu.memory_space<vmem>>, vector<8x8xbf16>
    %c0_35 = arith.constant 0 : index
    %c8_36 = arith.constant 8 : index
    %41 = vector.load %arg12[%c0_35, %c8_36] : memref<8x32xbf16, #tpu.memory_space<vmem>>, vector<8x8xbf16>
    %c0_37 = arith.constant 0 : index
    %c8_38 = arith.constant 8 : index
    %42 = vector.load %arg13[%c0_37, %c8_38] : memref<8x32xbf16, #tpu.memory_space<vmem>>, vector<8x8xbf16>
    %cst_39 = arith.constant dense<0.000000e+00> : vector<8x8xf32>
    %43 = tpu.matmul %40, %41, %cst_39 {dimension_numbers = #tpu.dot_dimension_numbers<[1], [1], [0], [0], [0, 0, 1, 0], [], []>} : vector<8x8xbf16>, vector<8x8xbf16>, vector<8x8xf32> -> vector<8x8xf32>
    %c0_40 = arith.constant 0 : index
    %c1 = arith.constant 1 : index
    %44 = vector.load %arg14[%c0_40, %c1] : memref<8x4xf32, #tpu.memory_space<vmem>>, vector<8x1xf32>
    %cst_41 = arith.constant dense<0xFF800000> : vector<8xf32>
    %45 = vector.multi_reduction <maximumf>, %43, %cst_41 [1] : vector<8x8xf32> to vector<8xf32>
    %46 = vector.shape_cast %45 : vector<8xf32> to vector<8x1xf32>
    %47 = arith.maximumf %44, %46 : vector<8x1xf32>
    %48 = arith.subf %44, %47 : vector<8x1xf32>
    %49 = math.exp %48 : vector<8x1xf32>
    %50 = vector.broadcast %47 : vector<8x1xf32> to vector<8x8xf32>
    %51 = arith.subf %43, %50 : vector<8x8xf32>
    %52 = math.exp %51 : vector<8x8xf32>
    %c0_42 = arith.constant 0 : index
    %c1_43 = arith.constant 1 : index
    %53 = vector.load %arg15[%c0_42, %c1_43] : memref<8x4xf32, #tpu.memory_space<vmem>>, vector<8x1xf32>
    %54 = arith.mulf %49, %53 : vector<8x1xf32>
    %cst_44 = arith.constant dense<0.000000e+00> : vector<8xf32>
    %55 = vector.multi_reduction <add>, %52, %cst_44 [1] : vector<8x8xf32> to vector<8xf32>
    %56 = vector.shape_cast %55 : vector<8xf32> to vector<8x1xf32>
    %57 = arith.addf %54, %56 : vector<8x1xf32>
    %c0_45 = arith.constant 0 : index
    %c1_46 = arith.constant 1 : index
    %58 = vector.load %arg15[%c0_45, %c1_46] : memref<8x4xf32, #tpu.memory_space<vmem>>, vector<8x1xf32>
    tpu.vector_store %arg15[%c0_45, %c1_46], %57 {strides = array<i32>} : memref<8x4xf32, #tpu.memory_space<vmem>>, vector<8x1xf32>,
    %c0_47 = arith.constant 0 : index
    %c8_48 = arith.constant 8 : index
    %59 = vector.load %arg16[%c0_47, %c8_48] : memref<8x32xf32, #tpu.memory_space<vmem>>, vector<8x8xf32>
    %60 = vector.broadcast %49 : vector<8x1xf32> to vector<8x8xf32>
    %61 = arith.mulf %60, %59 : vector<8x8xf32>
    %62 = arith.truncf %52 : vector<8x8xf32> to vector<8x8xbf16>
    %cst_49 = arith.constant dense<0.000000e+00> : vector<8x8xf32>
    %63 = tpu.matmul %62, %42, %cst_49 {dimension_numbers = #tpu.dot_dimension_numbers<[1], [0], [0], [1], [0, 0, 1, 1], [], []>} : vector<8x8xbf16>, vector<8x8xbf16>, vector<8x8xf32> -> vector<8x8xf32>
    %64 = arith.addf %61, %63 : vector<8x8xf32>
    %c0_50 = arith.constant 0 : index
    %c8_51 = arith.constant 8 : index
    %65 = vector.load %arg16[%c0_50, %c8_51] : memref<8x32xf32, #tpu.memory_space<vmem>>, vector<8x8xf32>
    tpu.vector_store %arg16[%c0_50, %c8_51], %64 {strides = array<i32>} : memref<8x32xf32, #tpu.memory_space<vmem>>, vector<8x8xf32>,
    %c0_52 = arith.constant 0 : index
    %c1_53 = arith.constant 1 : index
    %66 = vector.load %arg14[%c0_52, %c1_53] : memref<8x4xf32, #tpu.memory_space<vmem>>, vector<8x1xf32>
    tpu.vector_store %arg14[%c0_52, %c1_53], %47 {strides = array<i32>} : memref<8x4xf32, #tpu.memory_space<vmem>>, vector<8x1xf32>,
    %c0_54 = arith.constant 0 : index
    %c16 = arith.constant 16 : index
    %67 = vector.load %arg11[%c0_54, %c16] : memref<8x32xbf16, #tpu.memory_space<vmem>>, vector<8x8xbf16>
    %c0_55 = arith.constant 0 : index
    %c16_56 = arith.constant 16 : index
    %68 = vector.load %arg12[%c0_55, %c16_56] : memref<8x32xbf16, #tpu.memory_space<vmem>>, vector<8x8xbf16>
    %c0_57 = arith.constant 0 : index
    %c16_58 = arith.constant 16 : index
    %69 = vector.load %arg13[%c0_57, %c16_58] : memref<8x32xbf16, #tpu.memory_space<vmem>>, vector<8x8xbf16>
    %cst_59 = arith.constant dense<0.000000e+00> : vector<8x8xf32>
    %70 = tpu.matmul %67, %68, %cst_59 {dimension_numbers = #tpu.dot_dimension_numbers<[1], [1], [0], [0], [0, 0, 1, 0], [], []>} : vector<8x8xbf16>, vector<8x8xbf16>, vector<8x8xf32> -> vector<8x8xf32>
    %c0_60 = arith.constant 0 : index
    %c2 = arith.constant 2 : index
    %71 = vector.load %arg14[%c0_60, %c2] : memref<8x4xf32, #tpu.memory_space<vmem>>, vector<8x1xf32>
    %cst_61 = arith.constant dense<0xFF800000> : vector<8xf32>
    %72 = vector.multi_reduction <maximumf>, %70, %cst_61 [1] : vector<8x8xf32> to vector<8xf32>
    %73 = vector.shape_cast %72 : vector<8xf32> to vector<8x1xf32>
    %74 = arith.maximumf %71, %73 : vector<8x1xf32>
    %75 = arith.subf %71, %74 : vector<8x1xf32>
    %76 = math.exp %75 : vector<8x1xf32>
    %77 = vector.broadcast %74 : vector<8x1xf32> to vector<8x8xf32>
    %78 = arith.subf %70, %77 : vector<8x8xf32>
    %79 = math.exp %78 : vector<8x8xf32>
    %c0_62 = arith.constant 0 : index
    %c2_63 = arith.constant 2 : index
    %80 = vector.load %arg15[%c0_62, %c2_63] : memref<8x4xf32, #tpu.memory_space<vmem>>, vector<8x1xf32>
    %81 = arith.mulf %76, %80 : vector<8x1xf32>
    %cst_64 = arith.constant dense<0.000000e+00> : vector<8xf32>
    %82 = vector.multi_reduction <add>, %79, %cst_64 [1] : vector<8x8xf32> to vector<8xf32>
    %83 = vector.shape_cast %82 : vector<8xf32> to vector<8x1xf32>
    %84 = arith.addf %81, %83 : vector<8x1xf32>
    %c0_65 = arith.constant 0 : index
    %c2_66 = arith.constant 2 : index
    %85 = vector.load %arg15[%c0_65, %c2_66] : memref<8x4xf32, #tpu.memory_space<vmem>>, vector<8x1xf32>
    tpu.vector_store %arg15[%c0_65, %c2_66], %84 {strides = array<i32>} : memref<8x4xf32, #tpu.memory_space<vmem>>, vector<8x1xf32>,
    %c0_67 = arith.constant 0 : index
    %c16_68 = arith.constant 16 : index
    %86 = vector.load %arg16[%c0_67, %c16_68] : memref<8x32xf32, #tpu.memory_space<vmem>>, vector<8x8xf32>
    %87 = vector.broadcast %76 : vector<8x1xf32> to vector<8x8xf32>
    %88 = arith.mulf %87, %86 : vector<8x8xf32>
    %89 = arith.truncf %79 : vector<8x8xf32> to vector<8x8xbf16>
    %cst_69 = arith.constant dense<0.000000e+00> : vector<8x8xf32>
    %90 = tpu.matmul %89, %69, %cst_69 {dimension_numbers = #tpu.dot_dimension_numbers<[1], [0], [0], [1], [0, 0, 1, 1], [], []>} : vector<8x8xbf16>, vector<8x8xbf16>, vector<8x8xf32> -> vector<8x8xf32>
    %91 = arith.addf %88, %90 : vector<8x8xf32>
    %c0_70 = arith.constant 0 : index
    %c16_71 = arith.constant 16 : index
    %92 = vector.load %arg16[%c0_70, %c16_71] : memref<8x32xf32, #tpu.memory_space<vmem>>, vector<8x8xf32>
    tpu.vector_store %arg16[%c0_70, %c16_71], %91 {strides = array<i32>} : memref<8x32xf32, #tpu.memory_space<vmem>>, vector<8x8xf32>,
    %c0_72 = arith.constant 0 : index
    %c2_73 = arith.constant 2 : index
    %93 = vector.load %arg14[%c0_72, %c2_73] : memref<8x4xf32, #tpu.memory_space<vmem>>, vector<8x1xf32>
    tpu.vector_store %arg14[%c0_72, %c2_73], %74 {strides = array<i32>} : memref<8x4xf32, #tpu.memory_space<vmem>>, vector<8x1xf32>,
    %c0_74 = arith.constant 0 : index
    %c24 = arith.constant 24 : index
    %94 = vector.load %arg11[%c0_74, %c24] : memref<8x32xbf16, #tpu.memory_space<vmem>>, vector<8x8xbf16>
    %c0_75 = arith.constant 0 : index
    %c24_76 = arith.constant 24 : index
    %95 = vector.load %arg12[%c0_75, %c24_76] : memref<8x32xbf16, #tpu.memory_space<vmem>>, vector<8x8xbf16>
    %c0_77 = arith.constant 0 : index
    %c24_78 = arith.constant 24 : index
    %96 = vector.load %arg13[%c0_77, %c24_78] : memref<8x32xbf16, #tpu.memory_space<vmem>>, vector<8x8xbf16>
    %cst_79 = arith.constant dense<0.000000e+00> : vector<8x8xf32>
    %97 = tpu.matmul %94, %95, %cst_79 {dimension_numbers = #tpu.dot_dimension_numbers<[1], [1], [0], [0], [0, 0, 1, 0], [], []>} : vector<8x8xbf16>, vector<8x8xbf16>, vector<8x8xf32> -> vector<8x8xf32>
    %c0_80 = arith.constant 0 : index
    %c3 = arith.constant 3 : index
    %98 = vector.load %arg14[%c0_80, %c3] : memref<8x4xf32, #tpu.memory_space<vmem>>, vector<8x1xf32>
    %cst_81 = arith.constant dense<0xFF800000> : vector<8xf32>
    %99 = vector.multi_reduction <maximumf>, %97, %cst_81 [1] : vector<8x8xf32> to vector<8xf32>
    %100 = vector.shape_cast %99 : vector<8xf32> to vector<8x1xf32>
    %101 = arith.maximumf %98, %100 : vector<8x1xf32>
    %102 = arith.subf %98, %101 : vector<8x1xf32>
    %103 = math.exp %102 : vector<8x1xf32>
    %104 = vector.broadcast %101 : vector<8x1xf32> to vector<8x8xf32>
    %105 = arith.subf %97, %104 : vector<8x8xf32>
    %106 = math.exp %105 : vector<8x8xf32>
    %c0_82 = arith.constant 0 : index
    %c3_83 = arith.constant 3 : index
    %107 = vector.load %arg15[%c0_82, %c3_83] : memref<8x4xf32, #tpu.memory_space<vmem>>, vector<8x1xf32>
    %108 = arith.mulf %103, %107 : vector<8x1xf32>
    %cst_84 = arith.constant dense<0.000000e+00> : vector<8xf32>
    %109 = vector.multi_reduction <add>, %106, %cst_84 [1] : vector<8x8xf32> to vector<8xf32>
    %110 = vector.shape_cast %109 : vector<8xf32> to vector<8x1xf32>
    %111 = arith.addf %108, %110 : vector<8x1xf32>
    %c0_85 = arith.constant 0 : index
    %c3_86 = arith.constant 3 : index
    %112 = vector.load %arg15[%c0_85, %c3_86] : memref<8x4xf32, #tpu.memory_space<vmem>>, vector<8x1xf32>
    tpu.vector_store %arg15[%c0_85, %c3_86], %111 {strides = array<i32>} : memref<8x4xf32, #tpu.memory_space<vmem>>, vector<8x1xf32>,
    %c0_87 = arith.constant 0 : index
    %c24_88 = arith.constant 24 : index
    %113 = vector.load %arg16[%c0_87, %c24_88] : memref<8x32xf32, #tpu.memory_space<vmem>>, vector<8x8xf32>
    %114 = vector.broadcast %103 : vector<8x1xf32> to vector<8x8xf32>
    %115 = arith.mulf %114, %113 : vector<8x8xf32>
    %116 = arith.truncf %106 : vector<8x8xf32> to vector<8x8xbf16>
    %cst_89 = arith.constant dense<0.000000e+00> : vector<8x8xf32>
    %117 = tpu.matmul %116, %96, %cst_89 {dimension_numbers = #tpu.dot_dimension_numbers<[1], [0], [0], [1], [0, 0, 1, 1], [], []>} : vector<8x8xbf16>, vector<8x8xbf16>, vector<8x8xf32> -> vector<8x8xf32>
    %118 = arith.addf %115, %117 : vector<8x8xf32>
    %c0_90 = arith.constant 0 : index
    %c24_91 = arith.constant 24 : index
    %119 = vector.load %arg16[%c0_90, %c24_91] : memref<8x32xf32, #tpu.memory_space<vmem>>, vector<8x8xf32>
    tpu.vector_store %arg16[%c0_90, %c24_91], %118 {strides = array<i32>} : memref<8x32xf32, #tpu.memory_space<vmem>>, vector<8x8xf32>,
    %c0_92 = arith.constant 0 : index
    %c3_93 = arith.constant 3 : index
    %120 = vector.load %arg14[%c0_92, %c3_93] : memref<8x4xf32, #tpu.memory_space<vmem>>, vector<8x1xf32>
    tpu.vector_store %arg14[%c0_92, %c3_93], %101 {strides = array<i32>} : memref<8x4xf32, #tpu.memory_space<vmem>>, vector<8x1xf32>,
    %c0_i32_94 = arith.constant 0 : i32
    %121 = arith.cmpi eq, %arg2, %c0_i32_94 : i32
    %122 = arith.extui %121 : i1 to i32
    %c0_i32_95 = arith.constant 0 : i32
    %123 = arith.cmpi ne, %122, %c0_i32_95 : i32
    scf.if %123 {
      %c0_96 = arith.constant 0 : index
      %c0_97 = arith.constant 0 : index
      %124 = vector.load %arg15[%c0_96, %c0_97] : memref<8x4xf32, #tpu.memory_space<vmem>>, vector<8x1xf32>
      %125 = tpu.reciprocal %124 {approx = true} : vector<8x1xf32> -> vector<8x1xf32>
      %c0_98 = arith.constant 0 : index
      %c0_99 = arith.constant 0 : index
      %126 = vector.load %arg16[%c0_98, %c0_99] : memref<8x32xf32, #tpu.memory_space<vmem>>, vector<8x8xf32>
      %127 = vector.broadcast %125 : vector<8x1xf32> to vector<8x8xf32>
      %128 = arith.mulf %126, %127 : vector<8x8xf32>
      %c0_100 = arith.constant 0 : index
      %c0_101 = arith.constant 0 : index
      %129 = vector.load %arg16[%c0_100, %c0_101] : memref<8x32xf32, #tpu.memory_space<vmem>>, vector<8x8xf32>
      tpu.vector_store %arg16[%c0_100, %c0_101], %128 {strides = array<i32>} : memref<8x32xf32, #tpu.memory_space<vmem>>, vector<8x8xf32>,
      %c0_102 = arith.constant 0 : index
      %c1_103 = arith.constant 1 : index
      %130 = vector.load %arg15[%c0_102, %c1_103] : memref<8x4xf32, #tpu.memory_space<vmem>>, vector<8x1xf32>
      %131 = tpu.reciprocal %130 {approx = true} : vector<8x1xf32> -> vector<8x1xf32>
      %c0_104 = arith.constant 0 : index
      %c8_105 = arith.constant 8 : index
      %132 = vector.load %arg16[%c0_104, %c8_105] : memref<8x32xf32, #tpu.memory_space<vmem>>, vector<8x8xf32>
      %133 = vector.broadcast %131 : vector<8x1xf32> to vector<8x8xf32>
      %134 = arith.mulf %132, %133 : vector<8x8xf32>
      %c0_106 = arith.constant 0 : index
      %c8_107 = arith.constant 8 : index
      %135 = vector.load %arg16[%c0_106, %c8_107] : memref<8x32xf32, #tpu.memory_space<vmem>>, vector<8x8xf32>
      tpu.vector_store %arg16[%c0_106, %c8_107], %134 {strides = array<i32>} : memref<8x32xf32, #tpu.memory_space<vmem>>, vector<8x8xf32>,
      %c0_108 = arith.constant 0 : index
      %c2_109 = arith.constant 2 : index
      %136 = vector.load %arg15[%c0_108, %c2_109] : memref<8x4xf32, #tpu.memory_space<vmem>>, vector<8x1xf32>
      %137 = tpu.reciprocal %136 {approx = true} : vector<8x1xf32> -> vector<8x1xf32>
      %c0_110 = arith.constant 0 : index
      %c16_111 = arith.constant 16 : index
      %138 = vector.load %arg16[%c0_110, %c16_111] : memref<8x32xf32, #tpu.memory_space<vmem>>, vector<8x8xf32>
      %139 = vector.broadcast %137 : vector<8x1xf32> to vector<8x8xf32>
      %140 = arith.mulf %138, %139 : vector<8x8xf32>
      %c0_112 = arith.constant 0 : index
      %c16_113 = arith.constant 16 : index
      %141 = vector.load %arg16[%c0_112, %c16_113] : memref<8x32xf32, #tpu.memory_space<vmem>>, vector<8x8xf32>
      tpu.vector_store %arg16[%c0_112, %c16_113], %140 {strides = array<i32>} : memref<8x32xf32, #tpu.memory_space<vmem>>, vector<8x8xf32>,
      %c0_114 = arith.constant 0 : index
      %c3_115 = arith.constant 3 : index
      %142 = vector.load %arg15[%c0_114, %c3_115] : memref<8x4xf32, #tpu.memory_space<vmem>>, vector<8x1xf32>
      %143 = tpu.reciprocal %142 {approx = true} : vector<8x1xf32> -> vector<8x1xf32>
      %c0_116 = arith.constant 0 : index
      %c24_117 = arith.constant 24 : index
      %144 = vector.load %arg16[%c0_116, %c24_117] : memref<8x32xf32, #tpu.memory_space<vmem>>, vector<8x8xf32>
      %145 = vector.broadcast %143 : vector<8x1xf32> to vector<8x8xf32>
      %146 = arith.mulf %144, %145 : vector<8x8xf32>
      %c0_118 = arith.constant 0 : index
      %c24_119 = arith.constant 24 : index
      %147 = vector.load %arg16[%c0_118, %c24_119] : memref<8x32xf32, #tpu.memory_space<vmem>>, vector<8x8xf32>
      tpu.vector_store %arg16[%c0_118, %c24_119], %146 {strides = array<i32>} : memref<8x32xf32, #tpu.memory_space<vmem>>, vector<8x8xf32>,
      %c0_120 = arith.constant 0 : index
      %c0_121 = arith.constant 0 : index
      %148 = vector.load %arg16[%c0_120, %c0_121] : memref<8x32xf32, #tpu.memory_space<vmem>>, vector<8x32xf32>
      %149 = arith.truncf %148 : vector<8x32xf32> to vector<8x32xbf16>
      %c0_122 = arith.constant 0 : index
      %c0_123 = arith.constant 0 : index
      %150 = vector.load %arg8[%c0_122, %c0_123] : memref<32x32xbf16, #tpu.memory_space<vmem>>, vector<32x32xbf16>
      %cst_124 = arith.constant dense<0.000000e+00> : vector<8x32xf32>
      %151 = tpu.matmul %149, %150, %cst_124 {dimension_numbers = #tpu.dot_dimension_numbers<[1], [0], [0], [1], [0, 0, 1, 1], [], []>} : vector<8x32xbf16>, vector<32x32xbf16>, vector<8x32xf32> -> vector<8x32xf32>
      %c0_125 = arith.constant 0 : index
      %c0_126 = arith.constant 0 : index
      %152 = vector.load %arg9[%c0_125, %c0_126] : memref<1x32xf32, #tpu.memory_space<vmem>>, vector<1x32xf32>
      %153 = vector.broadcast %152 : vector<1x32xf32> to vector<8x32xf32>
      %154 = arith.addf %151, %153 : vector<8x32xf32>
      %c0_127 = arith.constant 0 : index
      %c0_128 = arith.constant 0 : index
      %c0_129 = arith.constant 0 : index
      %155 = vector.load %arg10[%c0_127, %c0_128, %c0_129] : memref<1x8x32xf32, #tpu.memory_space<vmem>>, vector<1x8x32xf32>
      %156 = vector.shape_cast %155 : vector<1x8x32xf32> to vector<8x32xf32>
      %157 = vector.shape_cast %154 : vector<8x32xf32> to vector<1x8x32xf32>
      tpu.vector_store %arg10[%c0_127, %c0_128, %c0_129], %157 {strides = array<i32>} : memref<1x8x32xf32, #tpu.memory_space<vmem>>, vector<1x8x32xf32>,
    } else {
    }
    return
  }
  func.func @transform_0(%arg0: i32, %arg1: i32, %arg2: i32) -> (i32, i32, i32) {
    %c0_i32 = arith.constant 0 : i32
    %c0_i32_0 = arith.constant 0 : i32
    return %arg0, %arg1, %c0_i32 : i32, i32, i32
  }
  func.func @transform_1(%arg0: i32, %arg1: i32, %arg2: i32) -> (i32, i32, i32) {
    %c0_i32 = arith.constant 0 : i32
    %c0_i32_0 = arith.constant 0 : i32
    return %arg0, %arg2, %c0_i32 : i32, i32, i32
  }
  func.func @transform_2(%arg0: i32, %arg1: i32, %arg2: i32) -> (i32, i32) {
    %c0_i32 = arith.constant 0 : i32
    %c0_i32_0 = arith.constant 0 : i32
    %c0_i32_1 = arith.constant 0 : i32
    return %c0_i32, %c0_i32_0 : i32, i32
  }
  func.func @transform_3(%arg0: i32, %arg1: i32, %arg2: i32) -> (i32, i32) {
    %c0_i32 = arith.constant 0 : i32
    %c0_i32_0 = arith.constant 0 : i32
    %c0_i32_1 = arith.constant 0 : i32
    return %c0_i32, %c0_i32_0 : i32, i32
  }
  func.func @transform_4(%arg0: i32, %arg1: i32, %arg2: i32) -> (i32, i32) {
    %c0_i32 = arith.constant 0 : i32
    %c0_i32_0 = arith.constant 0 : i32
    %c0_i32_1 = arith.constant 0 : i32
    return %c0_i32, %c0_i32_0 : i32, i32
  }
  func.func @transform_5(%arg0: i32, %arg1: i32, %arg2: i32) -> (i32, i32) {
    %c0_i32 = arith.constant 0 : i32
    %c0_i32_0 = arith.constant 0 : i32
    %c0_i32_1 = arith.constant 0 : i32
    return %c0_i32, %c0_i32_0 : i32, i32
  }
  func.func @transform_6(%arg0: i32, %arg1: i32, %arg2: i32) -> (i32, i32) {
    %c0_i32 = arith.constant 0 : i32
    %c0_i32_0 = arith.constant 0 : i32
    %c0_i32_1 = arith.constant 0 : i32
    return %c0_i32, %c0_i32_0 : i32, i32
  }
  func.func @transform_7(%arg0: i32, %arg1: i32, %arg2: i32) -> (i32, i32, i32) {
    %c0_i32 = arith.constant 0 : i32
    %c0_i32_0 = arith.constant 0 : i32
    return %arg0, %arg1, %c0_i32 : i32, i32, i32
  }
}

module attributes {stable_mosaic.version = 11 : i64} {
  func.func @_fused_cross_attn_kernel(%arg0: i32, %arg1: i32, %arg2: i32, %arg3: memref<1x8x32xbf16, #tpu.memory_space<vmem>>, %arg4: memref<1x8x32xbf16, #tpu.memory_space<vmem>>, %arg5: memref<32x32xbf16, #tpu.memory_space<vmem>>, %arg6: memref<32x32xbf16, #tpu.memory_space<vmem>>, %arg7: memref<32x32xbf16, #tpu.memory_space<vmem>>, %arg8: memref<32x32xbf16, #tpu.memory_space<vmem>>, %arg9: memref<1x32xf32, #tpu.memory_space<vmem>>, %arg10: memref<1x8x32xf32, #tpu.memory_space<vmem>>, %arg11: memref<8x32xbf16, #tpu.memory_space<vmem>>, %arg12: memref<8x32xbf16, #tpu.memory_space<vmem>>, %arg13: memref<8x32xbf16, #tpu.memory_space<vmem>>, %arg14: memref<8x4xf32, #tpu.memory_space<vmem>>, %arg15: memref<8x4xf32, #tpu.memory_space<vmem>>, %arg16: memref<8x32xf32, #tpu.memory_space<vmem>>) attributes {dimension_semantics = [#tpu.dimension_semantics<parallel>, #tpu.dimension_semantics<parallel>, #tpu.dimension_semantics<arbitrary>], iteration_bounds = array<i64: 2, 1, 1>, scalar_prefetch = 0 : i64, scratch_operands = 6 : i64, tpu.core_type = #tpu.core_type<tc>, window_params = [{transform_indices = @transform_0, window_bounds = array<i64: 1, 8, 32>}, {transform_indices = @transform_1, window_bounds = array<i64: 1, 8, 32>}, {pipeline_mode = #tpu.pipeline_mode<synchronous>, transform_indices = @transform_2, window_bounds = array<i64: 32, 32>}, {pipeline_mode = #tpu.pipeline_mode<synchronous>, transform_indices = @transform_3, window_bounds = array<i64: 32, 32>}, {pipeline_mode = #tpu.pipeline_mode<synchronous>, transform_indices = @transform_4, window_bounds = array<i64: 32, 32>}, {pipeline_mode = #tpu.pipeline_mode<synchronous>, transform_indices = @transform_5, window_bounds = array<i64: 32, 32>}, {pipeline_mode = #tpu.pipeline_mode<synchronous>, transform_indices = @transform_6, window_bounds = array<i64: 1, 32>}, {transform_indices = @transform_7, window_bounds = array<i64: 1, 8, 32>}]} {
    %c0_i32 = arith.constant 0 : i32
    %0 = arith.cmpi eq, %arg2, %c0_i32 : i32
    %1 = arith.extui %0 : i1 to i32
    %c0_i32_0 = arith.constant 0 : i32
    %2 = arith.cmpi ne, %1, %c0_i32_0 : i32
    scf.if %2 {
      %c0_96 = arith.constant 0 : index
      %c0_97 = arith.constant 0 : index
      %c0_98 = arith.constant 0 : index
      %124 = vector.load %arg3[%c0_96, %c0_97, %c0_98] : memref<1x8x32xbf16, #tpu.memory_space<vmem>>, vector<1x8x32xbf16>
      %125 = vector.shape_cast %124 : vector<1x8x32xbf16> to vector<8x32xbf16>
      %c0_99 = arith.constant 0 : index
      %c0_100 = arith.constant 0 : index
      %126 = vector.load %arg5[%c0_99, %c0_100] : memref<32x32xbf16, #tpu.memory_space<vmem>>, vector<32x32xbf16>
      %cst_101 = arith.constant dense<0.000000e+00> : vector<8x32xf32>
      %127 = tpu.matmul %125, %126, %cst_101 {dimension_numbers = #tpu.dot_dimension_numbers<[1], [0], [0], [1], [0, 0, 1, 1], [], []>} : vector<8x32xbf16>, vector<32x32xbf16>, vector<8x32xf32> -> vector<8x32xf32>
      %cst_102 = arith.constant 0.353553385 : f32
      %128 = vector.broadcast %cst_102 : f32 to vector<8x32xf32>
      %129 = arith.mulf %127, %128 : vector<8x32xf32>
      %130 = arith.truncf %129 : vector<8x32xf32> to vector<8x32xbf16>
      %c0_103 = arith.constant 0 : index
      %c0_104 = arith.constant 0 : index
      %131 = vector.load %arg11[%c0_103, %c0_104] : memref<8x32xbf16, #tpu.memory_space<vmem>>, vector<8x32xbf16>
      tpu.vector_store %arg11[%c0_103, %c0_104], %130 {strides = array<i32>} : memref<8x32xbf16, #tpu.memory_space<vmem>>, vector<8x32xbf16>,
      %cst_105 = arith.constant 0xFF800000 : f32
      %132 = vector.broadcast %cst_105 : f32 to vector<8x4xf32>
      %c0_106 = arith.constant 0 : index
      %c0_107 = arith.constant 0 : index
      %133 = vector.load %arg14[%c0_106, %c0_107] : memref<8x4xf32, #tpu.memory_space<vmem>>, vector<8x4xf32>
      tpu.vector_store %arg14[%c0_106, %c0_107], %132 {strides = array<i32>} : memref<8x4xf32, #tpu.memory_space<vmem>>, vector<8x4xf32>,
      %cst_108 = arith.constant 0.000000e+00 : f32
      %134 = vector.broadcast %cst_108 : f32 to vector<8x4xf32>
      %c0_109 = arith.constant 0 : index
      %c0_110 = arith.constant 0 : index
      %135 = vector.load %arg15[%c0_109, %c0_110] : memref<8x4xf32, #tpu.memory_space<vmem>>, vector<8x4xf32>
      tpu.vector_store %arg15[%c0_109, %c0_110], %134 {strides = array<i32>} : memref<8x4xf32, #tpu.memory_space<vmem>>, vector<8x4xf32>,
      %cst_111 = arith.constant 0.000000e+00 : f32
      %136 = vector.broadcast %cst_111 : f32 to vector<8x32xf32>
      %c0_112 = arith.constant 0 : index
      %c0_113 = arith.constant 0 : index
      %137 = vector.load %arg16[%c0_112, %c0_113] : memref<8x32xf32, #tpu.memory_space<vmem>>, vector<8x32xf32>
      tpu.vector_store %arg16[%c0_112, %c0_113], %136 {strides = array<i32>} : memref<8x32xf32, #tpu.memory_space<vmem>>, vector<8x32xf32>,
    } else {
    }
    %c0 = arith.constant 0 : index
    %c0_1 = arith.constant 0 : index
    %c0_2 = arith.constant 0 : index
    %3 = vector.load %arg4[%c0, %c0_1, %c0_2] : memref<1x8x32xbf16, #tpu.memory_space<vmem>>, vector<1x8x32xbf16>
    %4 = vector.shape_cast %3 : vector<1x8x32xbf16> to vector<8x32xbf16>
    %c0_3 = arith.constant 0 : index
    %c0_4 = arith.constant 0 : index
    %5 = vector.load %arg6[%c0_3, %c0_4] : memref<32x32xbf16, #tpu.memory_space<vmem>>, vector<32x32xbf16>
    %cst = arith.constant dense<0.000000e+00> : vector<8x32xf32>
    %6 = tpu.matmul %4, %5, %cst {dimension_numbers = #tpu.dot_dimension_numbers<[1], [0], [0], [1], [0, 0, 1, 1], [], []>} : vector<8x32xbf16>, vector<32x32xbf16>, vector<8x32xf32> -> vector<8x32xf32>
    %7 = arith.truncf %6 : vector<8x32xf32> to vector<8x32xbf16>
    %c0_5 = arith.constant 0 : index
    %c0_6 = arith.constant 0 : index
    %8 = vector.load %arg12[%c0_5, %c0_6] : memref<8x32xbf16, #tpu.memory_space<vmem>>, vector<8x32xbf16>
    tpu.vector_store %arg12[%c0_5, %c0_6], %7 {strides = array<i32>} : memref<8x32xbf16, #tpu.memory_space<vmem>>, vector<8x32xbf16>,
    %c0_7 = arith.constant 0 : index
    %c0_8 = arith.constant 0 : index
    %9 = vector.load %arg7[%c0_7, %c0_8] : memref<32x32xbf16, #tpu.memory_space<vmem>>, vector<32x32xbf16>
    %cst_9 = arith.constant dense<0.000000e+00> : vector<8x32xf32>
    %10 = tpu.matmul %4, %9, %cst_9 {dimension_numbers = #tpu.dot_dimension_numbers<[1], [0], [0], [1], [0, 0, 1, 1], [], []>} : vector<8x32xbf16>, vector<32x32xbf16>, vector<8x32xf32> -> vector<8x32xf32>
    %11 = arith.truncf %10 : vector<8x32xf32> to vector<8x32xbf16>
    %c0_10 = arith.constant 0 : index
    %c0_11 = arith.constant 0 : index
    %12 = vector.load %arg13[%c0_10, %c0_11] : memref<8x32xbf16, #tpu.memory_space<vmem>>, vector<8x32xbf16>
    tpu.vector_store %arg13[%c0_10, %c0_11], %11 {strides = array<i32>} : memref<8x32xbf16, #tpu.memory_space<vmem>>, vector<8x32xbf16>,
    %c0_12 = arith.constant 0 : index
    %c0_13 = arith.constant 0 : index
    %13 = vector.load %arg11[%c0_12, %c0_13] : memref<8x32xbf16, #tpu.memory_space<vmem>>, vector<8x8xbf16>
    %c0_14 = arith.constant 0 : index
    %c0_15 = arith.constant 0 : index
    %14 = vector.load %arg12[%c0_14, %c0_15] : memref<8x32xbf16, #tpu.memory_space<vmem>>, vector<8x8xbf16>
    %c0_16 = arith.constant 0 : index
    %c0_17 = arith.constant 0 : index
    %15 = vector.load %arg13[%c0_16, %c0_17] : memref<8x32xbf16, #tpu.memory_space<vmem>>, vector<8x8xbf16>
    %cst_18 = arith.constant dense<0.000000e+00> : vector<8x8xf32>
    %16 = tpu.matmul %13, %14, %cst_18 {dimension_numbers = #tpu.dot_dimension_numbers<[1], [1], [0], [0], [0, 0, 1, 0], [], []>} : vector<8x8xbf16>, vector<8x8xbf16>, vector<8x8xf32> -> vector<8x8xf32>
    %c0_19 = arith.constant 0 : index
    %c0_20 = arith.constant 0 : index
    %17 = vector.load %arg14[%c0_19, %c0_20] : memref<8x4xf32, #tpu.memory_space<vmem>>, vector<8x1xf32>
    %cst_21 = arith.constant dense<0xFF800000> : vector<8xf32>
    %18 = vector.multi_reduction <maximumf>, %16, %cst_21 [1] : vector<8x8xf32> to vector<8xf32>
    %19 = vector.shape_cast %18 : vector<8xf32> to vector<8x1xf32>
    %20 = arith.maximumf %17, %19 : vector<8x1xf32>
    %21 = arith.subf %17, %20 : vector<8x1xf32>
    %22 = math.exp %21 : vector<8x1xf32>
    %23 = vector.broadcast %20 : vector<8x1xf32> to vector<8x8xf32>
    %24 = arith.subf %16, %23 : vector<8x8xf32>
    %25 = math.exp %24 : vector<8x8xf32>
    %c0_22 = arith.constant 0 : index
    %c0_23 = arith.constant 0 : index
    %26 = vector.load %arg15[%c0_22, %c0_23] : memref<8x4xf32, #tpu.memory_space<vmem>>, vector<8x1xf32>
    %27 = arith.mulf %22, %26 : vector<8x1xf32>
    %cst_24 = arith.constant dense<0.000000e+00> : vector<8xf32>
    %28 = vector.multi_reduction <add>, %25, %cst_24 [1] : vector<8x8xf32> to vector<8xf32>
    %29 = vector.shape_cast %28 : vector<8xf32> to vector<8x1xf32>
    %30 = arith.addf %27, %29 : vector<8x1xf32>
    %c0_25 = arith.constant 0 : index
    %c0_26 = arith.constant 0 : index
    %31 = vector.load %arg15[%c0_25, %c0_26] : memref<8x4xf32, #tpu.memory_space<vmem>>, vector<8x1xf32>
    tpu.vector_store %arg15[%c0_25, %c0_26], %30 {strides = array<i32>} : memref<8x4xf32, #tpu.memory_space<vmem>>, vector<8x1xf32>,
    %c0_27 = arith.constant 0 : index
    %c0_28 = arith.constant 0 : index
    %32 = vector.load %arg16[%c0_27, %c0_28] : memref<8x32xf32, #tpu.memory_space<vmem>>, vector<8x8xf32>
    %33 = vector.broadcast %22 : vector<8x1xf32> to vector<8x8xf32>
    %34 = arith.mulf %33, %32 : vector<8x8xf32>
    %35 = arith.truncf %25 : vector<8x8xf32> to vector<8x8xbf16>
    %cst_29 = arith.constant dense<0.000000e+00> : vector<8x8xf32>
    %36 = tpu.matmul %35, %15, %cst_29 {dimension_numbers = #tpu.dot_dimension_numbers<[1], [0], [0], [1], [0, 0, 1, 1], [], []>} : vector<8x8xbf16>, vector<8x8xbf16>, vector<8x8xf32> -> vector<8x8xf32>
    %37 = arith.addf %34, %36 : vector<8x8xf32>
    %c0_30 = arith.constant 0 : index
    %c0_31 = arith.constant 0 : index
    %38 = vector.load %arg16[%c0_30, %c0_31] : memref<8x32xf32, #tpu.memory_space<vmem>>, vector<8x8xf32>
    tpu.vector_store %arg16[%c0_30, %c0_31], %37 {strides = array<i32>} : memref<8x32xf32, #tpu.memory_space<vmem>>, vector<8x8xf32>,
    %c0_32 = arith.constant 0 : index
    %c0_33 = arith.constant 0 : index
    %39 = vector.load %arg14[%c0_32, %c0_33] : memref<8x4xf32, #tpu.memory_space<vmem>>, vector<8x1xf32>
    tpu.vector_store %arg14[%c0_32, %c0_33], %20 {strides = array<i32>} : memref<8x4xf32, #tpu.memory_space<vmem>>, vector<8x1xf32>,
    %c0_34 = arith.constant 0 : index
    %c8 = arith.constant 8 : index
    %40 = vector.load %arg11[%c0_34, %c8] : memref<8x32xbf16, #tpu.memory_space<vmem>>, vector<8x8xbf16>
    %c0_35 = arith.constant 0 : index
    %c8_36 = arith.constant 8 : index
    %41 = vector.load %arg12[%c0_35, %c8_36] : memref<8x32xbf16, #tpu.memory_space<vmem>>, vector<8x8xbf16>
    %c0_37 = arith.constant 0 : index
    %c8_38 = arith.constant 8 : index
    %42 = vector.load %arg13[%c0_37, %c8_38] : memref<8x32xbf16, #tpu.memory_space<vmem>>, vector<8x8xbf16>
    %cst_39 = arith.constant dense<0.000000e+00> : vector<8x8xf32>
    %43 = tpu.matmul %40, %41, %cst_39 {dimension_numbers = #tpu.dot_dimension_numbers<[1], [1], [0], [0], [0, 0, 1, 0], [], []>} : vector<8x8xbf16>, vector<8x8xbf16>, vector<8x8xf32> -> vector<8x8xf32>
    %c0_40 = arith.constant 0 : index
    %c1 = arith.constant 1 : index
    %44 = vector.load %arg14[%c0_40, %c1] : memref<8x4xf32, #tpu.memory_space<vmem>>, vector<8x1xf32>
    %cst_41 = arith.constant dense<0xFF800000> : vector<8xf32>
    %45 = vector.multi_reduction <maximumf>, %43, %cst_41 [1] : vector<8x8xf32> to vector<8xf32>
    %46 = vector.shape_cast %45 : vector<8xf32> to vector<8x1xf32>
    %47 = arith.maximumf %44, %46 : vector<8x1xf32>
    %48 = arith.subf %44, %47 : vector<8x1xf32>
    %49 = math.exp %48 : vector<8x1xf32>
    %50 = vector.broadcast %47 : vector<8x1xf32> to vector<8x8xf32>
    %51 = arith.subf %43, %50 : vector<8x8xf32>
    %52 = math.exp %51 : vector<8x8xf32>
    %c0_42 = arith.constant 0 : index
    %c1_43 = arith.constant 1 : index
    %53 = vector.load %arg15[%c0_42, %c1_43] : memref<8x4xf32, #tpu.memory_space<vmem>>, vector<8x1xf32>
    %54 = arith.mulf %49, %53 : vector<8x1xf32>
    %cst_44 = arith.constant dense<0.000000e+00> : vector<8xf32>
    %55 = vector.multi_reduction <add>, %52, %cst_44 [1] : vector<8x8xf32> to vector<8xf32>
    %56 = vector.shape_cast %55 : vector<8xf32> to vector<8x1xf32>
    %57 = arith.addf %54, %56 : vector<8x1xf32>
    %c0_45 = arith.constant 0 : index
    %c1_46 = arith.constant 1 : index
    %58 = vector.load %arg15[%c0_45, %c1_46] : memref<8x4xf32, #tpu.memory_space<vmem>>, vector<8x1xf32>
    tpu.vector_store %arg15[%c0_45, %c1_46], %57 {strides = array<i32>} : memref<8x4xf32, #tpu.memory_space<vmem>>, vector<8x1xf32>,
    %c0_47 = arith.constant 0 : index
    %c8_48 = arith.constant 8 : index
    %59 = vector.load %arg16[%c0_47, %c8_48] : memref<8x32xf32, #tpu.memory_space<vmem>>, vector<8x8xf32>
    %60 = vector.broadcast %49 : vector<8x1xf32> to vector<8x8xf32>
    %61 = arith.mulf %60, %59 : vector<8x8xf32>
    %62 = arith.truncf %52 : vector<8x8xf32> to vector<8x8xbf16>
    %cst_49 = arith.constant dense<0.000000e+00> : vector<8x8xf32>
    %63 = tpu.matmul %62, %42, %cst_49 {dimension_numbers = #tpu.dot_dimension_numbers<[1], [0], [0], [1], [0, 0, 1, 1], [], []>} : vector<8x8xbf16>, vector<8x8xbf16>, vector<8x8xf32> -> vector<8x8xf32>
    %64 = arith.addf %61, %63 : vector<8x8xf32>
    %c0_50 = arith.constant 0 : index
    %c8_51 = arith.constant 8 : index
    %65 = vector.load %arg16[%c0_50, %c8_51] : memref<8x32xf32, #tpu.memory_space<vmem>>, vector<8x8xf32>
    tpu.vector_store %arg16[%c0_50, %c8_51], %64 {strides = array<i32>} : memref<8x32xf32, #tpu.memory_space<vmem>>, vector<8x8xf32>,
    %c0_52 = arith.constant 0 : index
    %c1_53 = arith.constant 1 : index
    %66 = vector.load %arg14[%c0_52, %c1_53] : memref<8x4xf32, #tpu.memory_space<vmem>>, vector<8x1xf32>
    tpu.vector_store %arg14[%c0_52, %c1_53], %47 {strides = array<i32>} : memref<8x4xf32, #tpu.memory_space<vmem>>, vector<8x1xf32>,
    %c0_54 = arith.constant 0 : index
    %c16 = arith.constant 16 : index
    %67 = vector.load %arg11[%c0_54, %c16] : memref<8x32xbf16, #tpu.memory_space<vmem>>, vector<8x8xbf16>
    %c0_55 = arith.constant 0 : index
    %c16_56 = arith.constant 16 : index
    %68 = vector.load %arg12[%c0_55, %c16_56] : memref<8x32xbf16, #tpu.memory_space<vmem>>, vector<8x8xbf16>
    %c0_57 = arith.constant 0 : index
    %c16_58 = arith.constant 16 : index
    %69 = vector.load %arg13[%c0_57, %c16_58] : memref<8x32xbf16, #tpu.memory_space<vmem>>, vector<8x8xbf16>
    %cst_59 = arith.constant dense<0.000000e+00> : vector<8x8xf32>
    %70 = tpu.matmul %67, %68, %cst_59 {dimension_numbers = #tpu.dot_dimension_numbers<[1], [1], [0], [0], [0, 0, 1, 0], [], []>} : vector<8x8xbf16>, vector<8x8xbf16>, vector<8x8xf32> -> vector<8x8xf32>
    %c0_60 = arith.constant 0 : index
    %c2 = arith.constant 2 : index
    %71 = vector.load %arg14[%c0_60, %c2] : memref<8x4xf32, #tpu.memory_space<vmem>>, vector<8x1xf32>
    %cst_61 = arith.constant dense<0xFF800000> : vector<8xf32>
    %72 = vector.multi_reduction <maximumf>, %70, %cst_61 [1] : vector<8x8xf32> to vector<8xf32>
    %73 = vector.shape_cast %72 : vector<8xf32> to vector<8x1xf32>
    %74 = arith.maximumf %71, %73 : vector<8x1xf32>
    %75 = arith.subf %71, %74 : vector<8x1xf32>
    %76 = math.exp %75 : vector<8x1xf32>
    %77 = vector.broadcast %74 : vector<8x1xf32> to vector<8x8xf32>
    %78 = arith.subf %70, %77 : vector<8x8xf32>
    %79 = math.exp %78 : vector<8x8xf32>
    %c0_62 = arith.constant 0 : index
    %c2_63 = arith.constant 2 : index
    %80 = vector.load %arg15[%c0_62, %c2_63] : memref<8x4xf32, #tpu.memory_space<vmem>>, vector<8x1xf32>
    %81 = arith.mulf %76, %80 : vector<8x1xf32>
    %cst_64 = arith.constant dense<0.000000e+00> : vector<8xf32>
    %82 = vector.multi_reduction <add>, %79, %cst_64 [1] : vector<8x8xf32> to vector<8xf32>
    %83 = vector.shape_cast %82 : vector<8xf32> to vector<8x1xf32>
    %84 = arith.addf %81, %83 : vector<8x1xf32>
    %c0_65 = arith.constant 0 : index
    %c2_66 = arith.constant 2 : index
    %85 = vector.load %arg15[%c0_65, %c2_66] : memref<8x4xf32, #tpu.memory_space<vmem>>, vector<8x1xf32>
    tpu.vector_store %arg15[%c0_65, %c2_66], %84 {strides = array<i32>} : memref<8x4xf32, #tpu.memory_space<vmem>>, vector<8x1xf32>,
    %c0_67 = arith.constant 0 : index
    %c16_68 = arith.constant 16 : index
    %86 = vector.load %arg16[%c0_67, %c16_68] : memref<8x32xf32, #tpu.memory_space<vmem>>, vector<8x8xf32>
    %87 = vector.broadcast %76 : vector<8x1xf32> to vector<8x8xf32>
    %88 = arith.mulf %87, %86 : vector<8x8xf32>
    %89 = arith.truncf %79 : vector<8x8xf32> to vector<8x8xbf16>
    %cst_69 = arith.constant dense<0.000000e+00> : vector<8x8xf32>
    %90 = tpu.matmul %89, %69, %cst_69 {dimension_numbers = #tpu.dot_dimension_numbers<[1], [0], [0], [1], [0, 0, 1, 1], [], []>} : vector<8x8xbf16>, vector<8x8xbf16>, vector<8x8xf32> -> vector<8x8xf32>
    %91 = arith.addf %88, %90 : vector<8x8xf32>
    %c0_70 = arith.constant 0 : index
    %c16_71 = arith.constant 16 : index
    %92 = vector.load %arg16[%c0_70, %c16_71] : memref<8x32xf32, #tpu.memory_space<vmem>>, vector<8x8xf32>
    tpu.vector_store %arg16[%c0_70, %c16_71], %91 {strides = array<i32>} : memref<8x32xf32, #tpu.memory_space<vmem>>, vector<8x8xf32>,
    %c0_72 = arith.constant 0 : index
    %c2_73 = arith.constant 2 : index
    %93 = vector.load %arg14[%c0_72, %c2_73] : memref<8x4xf32, #tpu.memory_space<vmem>>, vector<8x1xf32>
    tpu.vector_store %arg14[%c0_72, %c2_73], %74 {strides = array<i32>} : memref<8x4xf32, #tpu.memory_space<vmem>>, vector<8x1xf32>,
    %c0_74 = arith.constant 0 : index
    %c24 = arith.constant 24 : index
    %94 = vector.load %arg11[%c0_74, %c24] : memref<8x32xbf16, #tpu.memory_space<vmem>>, vector<8x8xbf16>
    %c0_75 = arith.constant 0 : index
    %c24_76 = arith.constant 24 : index
    %95 = vector.load %arg12[%c0_75, %c24_76] : memref<8x32xbf16, #tpu.memory_space<vmem>>, vector<8x8xbf16>
    %c0_77 = arith.constant 0 : index
    %c24_78 = arith.constant 24 : index
    %96 = vector.load %arg13[%c0_77, %c24_78] : memref<8x32xbf16, #tpu.memory_space<vmem>>, vector<8x8xbf16>
    %cst_79 = arith.constant dense<0.000000e+00> : vector<8x8xf32>
    %97 = tpu.matmul %94, %95, %cst_79 {dimension_numbers = #tpu.dot_dimension_numbers<[1], [1], [0], [0], [0, 0, 1, 0], [], []>} : vector<8x8xbf16>, vector<8x8xbf16>, vector<8x8xf32> -> vector<8x8xf32>
    %c0_80 = arith.constant 0 : index
    %c3 = arith.constant 3 : index
    %98 = vector.load %arg14[%c0_80, %c3] : memref<8x4xf32, #tpu.memory_space<vmem>>, vector<8x1xf32>
    %cst_81 = arith.constant dense<0xFF800000> : vector<8xf32>
    %99 = vector.multi_reduction <maximumf>, %97, %cst_81 [1] : vector<8x8xf32> to vector<8xf32>
    %100 = vector.shape_cast %99 : vector<8xf32> to vector<8x1xf32>
    %101 = arith.maximumf %98, %100 : vector<8x1xf32>
    %102 = arith.subf %98, %101 : vector<8x1xf32>
    %103 = math.exp %102 : vector<8x1xf32>
    %104 = vector.broadcast %101 : vector<8x1xf32> to vector<8x8xf32>
    %105 = arith.subf %97, %104 : vector<8x8xf32>
    %106 = math.exp %105 : vector<8x8xf32>
    %c0_82 = arith.constant 0 : index
    %c3_83 = arith.constant 3 : index
    %107 = vector.load %arg15[%c0_82, %c3_83] : memref<8x4xf32, #tpu.memory_space<vmem>>, vector<8x1xf32>
    %108 = arith.mulf %103, %107 : vector<8x1xf32>
    %cst_84 = arith.constant dense<0.000000e+00> : vector<8xf32>
    %109 = vector.multi_reduction <add>, %106, %cst_84 [1] : vector<8x8xf32> to vector<8xf32>
    %110 = vector.shape_cast %109 : vector<8xf32> to vector<8x1xf32>
    %111 = arith.addf %108, %110 : vector<8x1xf32>
    %c0_85 = arith.constant 0 : index
    %c3_86 = arith.constant 3 : index
    %112 = vector.load %arg15[%c0_85, %c3_86] : memref<8x4xf32, #tpu.memory_space<vmem>>, vector<8x1xf32>
    tpu.vector_store %arg15[%c0_85, %c3_86], %111 {strides = array<i32>} : memref<8x4xf32, #tpu.memory_space<vmem>>, vector<8x1xf32>,
    %c0_87 = arith.constant 0 : index
    %c24_88 = arith.constant 24 : index
    %113 = vector.load %arg16[%c0_87, %c24_88] : memref<8x32xf32, #tpu.memory_space<vmem>>, vector<8x8xf32>
    %114 = vector.broadcast %103 : vector<8x1xf32> to vector<8x8xf32>
    %115 = arith.mulf %114, %113 : vector<8x8xf32>
    %116 = arith.truncf %106 : vector<8x8xf32> to vector<8x8xbf16>
    %cst_89 = arith.constant dense<0.000000e+00> : vector<8x8xf32>
    %117 = tpu.matmul %116, %96, %cst_89 {dimension_numbers = #tpu.dot_dimension_numbers<[1], [0], [0], [1], [0, 0, 1, 1], [], []>} : vector<8x8xbf16>, vector<8x8xbf16>, vector<8x8xf32> -> vector<8x8xf32>
    %118 = arith.addf %115, %117 : vector<8x8xf32>
    %c0_90 = arith.constant 0 : index
    %c24_91 = arith.constant 24 : index
    %119 = vector.load %arg16[%c0_90, %c24_91] : memref<8x32xf32, #tpu.memory_space<vmem>>, vector<8x8xf32>
    tpu.vector_store %arg16[%c0_90, %c24_91], %118 {strides = array<i32>} : memref<8x32xf32, #tpu.memory_space<vmem>>, vector<8x8xf32>,
    %c0_92 = arith.constant 0 : index
    %c3_93 = arith.constant 3 : index
    %120 = vector.load %arg14[%c0_92, %c3_93] : memref<8x4xf32, #tpu.memory_space<vmem>>, vector<8x1xf32>
    tpu.vector_store %arg14[%c0_92, %c3_93], %101 {strides = array<i32>} : memref<8x4xf32, #tpu.memory_space<vmem>>, vector<8x1xf32>,
    %c0_i32_94 = arith.constant 0 : i32
    %121 = arith.cmpi eq, %arg2, %c0_i32_94 : i32
    %122 = arith.extui %121 : i1 to i32
    %c0_i32_95 = arith.constant 0 : i32
    %123 = arith.cmpi ne, %122, %c0_i32_95 : i32
    scf.if %123 {
      %c0_96 = arith.constant 0 : index
      %c0_97 = arith.constant 0 : index
      %124 = vector.load %arg15[%c0_96, %c0_97] : memref<8x4xf32, #tpu.memory_space<vmem>>, vector<8x1xf32>
      %125 = tpu.reciprocal %124 {approx = true} : vector<8x1xf32> -> vector<8x1xf32>
      %c0_98 = arith.constant 0 : index
      %c0_99 = arith.constant 0 : index
      %126 = vector.load %arg16[%c0_98, %c0_99] : memref<8x32xf32, #tpu.memory_space<vmem>>, vector<8x8xf32>
      %127 = vector.broadcast %125 : vector<8x1xf32> to vector<8x8xf32>
      %128 = arith.mulf %126, %127 : vector<8x8xf32>
      %c0_100 = arith.constant 0 : index
      %c0_101 = arith.constant 0 : index
      %129 = vector.load %arg16[%c0_100, %c0_101] : memref<8x32xf32, #tpu.memory_space<vmem>>, vector<8x8xf32>
      tpu.vector_store %arg16[%c0_100, %c0_101], %128 {strides = array<i32>} : memref<8x32xf32, #tpu.memory_space<vmem>>, vector<8x8xf32>,
      %c0_102 = arith.constant 0 : index
      %c1_103 = arith.constant 1 : index
      %130 = vector.load %arg15[%c0_102, %c1_103] : memref<8x4xf32, #tpu.memory_space<vmem>>, vector<8x1xf32>
      %131 = tpu.reciprocal %130 {approx = true} : vector<8x1xf32> -> vector<8x1xf32>
      %c0_104 = arith.constant 0 : index
      %c8_105 = arith.constant 8 : index
      %132 = vector.load %arg16[%c0_104, %c8_105] : memref<8x32xf32, #tpu.memory_space<vmem>>, vector<8x8xf32>
      %133 = vector.broadcast %131 : vector<8x1xf32> to vector<8x8xf32>
      %134 = arith.mulf %132, %133 : vector<8x8xf32>
      %c0_106 = arith.constant 0 : index
      %c8_107 = arith.constant 8 : index
      %135 = vector.load %arg16[%c0_106, %c8_107] : memref<8x32xf32, #tpu.memory_space<vmem>>, vector<8x8xf32>
      tpu.vector_store %arg16[%c0_106, %c8_107], %134 {strides = array<i32>} : memref<8x32xf32, #tpu.memory_space<vmem>>, vector<8x8xf32>,
      %c0_108 = arith.constant 0 : index
      %c2_109 = arith.constant 2 : index
      %136 = vector.load %arg15[%c0_108, %c2_109] : memref<8x4xf32, #tpu.memory_space<vmem>>, vector<8x1xf32>
      %137 = tpu.reciprocal %136 {approx = true} : vector<8x1xf32> -> vector<8x1xf32>
      %c0_110 = arith.constant 0 : index
      %c16_111 = arith.constant 16 : index
      %138 = vector.load %arg16[%c0_110, %c16_111] : memref<8x32xf32, #tpu.memory_space<vmem>>, vector<8x8xf32>
      %139 = vector.broadcast %137 : vector<8x1xf32> to vector<8x8xf32>
      %140 = arith.mulf %138, %139 : vector<8x8xf32>
      %c0_112 = arith.constant 0 : index
      %c16_113 = arith.constant 16 : index
      %141 = vector.load %arg16[%c0_112, %c16_113] : memref<8x32xf32, #tpu.memory_space<vmem>>, vector<8x8xf32>
      tpu.vector_store %arg16[%c0_112, %c16_113], %140 {strides = array<i32>} : memref<8x32xf32, #tpu.memory_space<vmem>>, vector<8x8xf32>,
      %c0_114 = arith.constant 0 : index
      %c3_115 = arith.constant 3 : index
      %142 = vector.load %arg15[%c0_114, %c3_115] : memref<8x4xf32, #tpu.memory_space<vmem>>, vector<8x1xf32>
      %143 = tpu.reciprocal %142 {approx = true} : vector<8x1xf32> -> vector<8x1xf32>
      %c0_116 = arith.constant 0 : index
      %c24_117 = arith.constant 24 : index
      %144 = vector.load %arg16[%c0_116, %c24_117] : memref<8x32xf32, #tpu.memory_space<vmem>>, vector<8x8xf32>
      %145 = vector.broadcast %143 : vector<8x1xf32> to vector<8x8xf32>
      %146 = arith.mulf %144, %145 : vector<8x8xf32>
      %c0_118 = arith.constant 0 : index
      %c24_119 = arith.constant 24 : index
      %147 = vector.load %arg16[%c0_118, %c24_119] : memref<8x32xf32, #tpu.memory_space<vmem>>, vector<8x8xf32>
      tpu.vector_store %arg16[%c0_118, %c24_119], %146 {strides = array<i32>} : memref<8x32xf32, #tpu.memory_space<vmem>>, vector<8x8xf32>,
      %c0_120 = arith.constant 0 : index
      %c0_121 = arith.constant 0 : index
      %148 = vector.load %arg16[%c0_120, %c0_121] : memref<8x32xf32, #tpu.memory_space<vmem>>, vector<8x32xf32>
      %149 = arith.truncf %148 : vector<8x32xf32> to vector<8x32xbf16>
      %c0_122 = arith.constant 0 : index
      %c0_123 = arith.constant 0 : index
      %150 = vector.load %arg8[%c0_122, %c0_123] : memref<32x32xbf16, #tpu.memory_space<vmem>>, vector<32x32xbf16>
      %cst_124 = arith.constant dense<0.000000e+00> : vector<8x32xf32>
      %151 = tpu.matmul %149, %150, %cst_124 {dimension_numbers = #tpu.dot_dimension_numbers<[1], [0], [0], [1], [0, 0, 1, 1], [], []>} : vector<8x32xbf16>, vector<32x32xbf16>, vector<8x32xf32> -> vector<8x32xf32>
      %c0_125 = arith.constant 0 : index
      %c0_126 = arith.constant 0 : index
      %152 = vector.load %arg9[%c0_125, %c0_126] : memref<1x32xf32, #tpu.memory_space<vmem>>, vector<1x32xf32>
      %153 = vector.broadcast %152 : vector<1x32xf32> to vector<8x32xf32>
      %154 = arith.addf %151, %153 : vector<8x32xf32>
      %c0_127 = arith.constant 0 : index
      %c0_128 = arith.constant 0 : index
      %c0_129 = arith.constant 0 : index
      %155 = vector.load %arg10[%c0_127, %c0_128, %c0_129] : memref<1x8x32xf32, #tpu.memory_space<vmem>>, vector<1x8x32xf32>
      %156 = vector.shape_cast %155 : vector<1x8x32xf32> to vector<8x32xf32>
      %157 = vector.shape_cast %154 : vector<8x32xf32> to vector<1x8x32xf32>
      tpu.vector_store %arg10[%c0_127, %c0_128, %c0_129], %157 {strides = array<i32>} : memref<1x8x32xf32, #tpu.memory_space<vmem>>, vector<1x8x32xf32>,
    } else {
    }
    return
  }
  func.func @transform_0(%arg0: i32, %arg1: i32, %arg2: i32) -> (i32, i32, i32) {
    %c0_i32 = arith.constant 0 : i32
    %c0_i32_0 = arith.constant 0 : i32
    return %arg0, %arg1, %c0_i32 : i32, i32, i32
  }
  func.func @transform_1(%arg0: i32, %arg1: i32, %arg2: i32) -> (i32, i32, i32) {
    %c0_i32 = arith.constant 0 : i32
    %c0_i32_0 = arith.constant 0 : i32
    return %arg0, %arg2, %c0_i32 : i32, i32, i32
  }
  func.func @transform_2(%arg0: i32, %arg1: i32, %arg2: i32) -> (i32, i32) {
    %c0_i32 = arith.constant 0 : i32
    %c0_i32_0 = arith.constant 0 : i32
    %c0_i32_1 = arith.constant 0 : i32
    return %c0_i32, %c0_i32_0 : i32, i32
  }
  func.func @transform_3(%arg0: i32, %arg1: i32, %arg2: i32) -> (i32, i32) {
    %c0_i32 = arith.constant 0 : i32
    %c0_i32_0 = arith.constant 0 : i32
    %c0_i32_1 = arith.constant 0 : i32
    return %c0_i32, %c0_i32_0 : i32, i32
  }
  func.func @transform_4(%arg0: i32, %arg1: i32, %arg2: i32) -> (i32, i32) {
    %c0_i32 = arith.constant 0 : i32
    %c0_i32_0 = arith.constant 0 : i32
    %c0_i32_1 = arith.constant 0 : i32
    return %c0_i32, %c0_i32_0 : i32, i32
  }
  func.func @transform_5(%arg0: i32, %arg1: i32, %arg2: i32) -> (i32, i32) {
    %c0_i32 = arith.constant 0 : i32
    %c0_i32_0 = arith.constant 0 : i32
    %c0_i32_1 = arith.constant 0 : i32
    return %c0_i32, %c0_i32_0 : i32, i32
  }
  func.func @transform_6(%arg0: i32, %arg1: i32, %arg2: i32) -> (i32, i32) {
    %c0_i32 = arith.constant 0 : i32
    %c0_i32_0 = arith.constant 0 : i32
    %c0_i32_1 = arith.constant 0 : i32
    return %c0_i32, %c0_i32_0 : i32, i32
  }
  func.func @transform_7(%arg0: i32, %arg1: i32, %arg2: i32) -> (i32, i32, i32) {
    %c0_i32 = arith.constant 0 : i32
    %c0_i32_0 = arith.constant 0 : i32
    return %arg0, %arg1, %c0_i32 : i32, i32, i32
  }
}

</mosaic_0001>

<bundles_post_ra>
// kernel: tpu_custom_call.1
= control target key start
LH: loop header
LB: loop body
LE: loop exit
PB: predicated region body
PF: predicated region fallthrough
CT: control target
= control target key end

     0   :  { %s2036_s0 = inlined_call_operand.hbm [shape: bf16[2,8,32], index: 0, kind: input, shape index: {}]   ;;  %s2037_s1 = inlined_call_operand.hbm [shape: bf16[2,8,32], index: 1, kind: input, shape index: {}]   ;;  %s2038_s2 = inlined_call_operand.hbm [shape: bf16[32,32], index: 2, kind: input, shape index: {}]   ;;  %s2039_s3 = inlined_call_operand.hbm [shape: bf16[32,32], index: 3, kind: input, shape index: {}]   ;;  %s2040_s4 = inlined_call_operand.hbm [shape: bf16[32,32], index: 4, kind: input, shape index: {}]   ;;  %s2041_s5 = inlined_call_operand.hbm [shape: bf16[32,32], index: 5, kind: input, shape index: {}]   ;;  %s2042_s6 = inlined_call_operand.vmem [shape: f32[1,32], index: 6, kind: input, shape index: {}]   ;;  %s2043_s7 = inlined_call_operand.hbm [shape: f32[2,8,32], index: 7, kind: output, shape index: {}]  }
   0x1   :  { %2047 = sst [smem:[#allocation30_spill]] %s2038_s2 }
   0x2   :  { %2048 = sst [smem:[#allocation31_spill]] %s2039_s3 }
   0x3   :  { %2049 = sst [smem:[#allocation32_spill]] %s2040_s4 }
   0x4   :  { %2050 = sst [smem:[#allocation33_spill]] %s2041_s5 }
   0x5   :  { %12 = vsyncpa [#allocation9], 0 }
   0x6   :  { %14 = vsyncpa [#allocation9 + $0x1], 0 }
   0x7   :  { %15 = vsyncpa [#allocation12], 0 }
   0x8   :  { %17 = vsyncpa [#allocation12 + $0x1], 0 }
   0x9   :  { %18 = vsyncpa [#allocation15], 0 }
   0xa   :  { %19 = vsyncpa [#allocation18], 0 }
   0xb   :  { %20 = vsyncpa [#allocation10], 0 }
   0xc   :  { %22 = vsyncpa [#allocation10 + $0x1], 0  ;;  %s1720_s24 = smov 0   ;;  %s1722_s25 = smov 0  }
   0xd   :  { %s1724_s26 = smov 0   ;;  %s1726_s27 = smov 0  }
   0xe   :  { %s1728_s28 = smov 0   ;;  %s1730_s29 = smov 0  }
   0xf LB: > { %2051 = sst [smem:[#allocation26_spill]] %s1648_s26  ;;  %s1751_s30 = sadd.s32 4294967295, %s1660_s29   ;;  %s1660_s29 = sphi %s1730_s29, %s28_s29   ;;  %s1656_s28 = sphi %s1728_s28, %s2068_s28   ;;  %s1652_s27 = sphi %s1726_s27, %s2067_s27   ;;  %s1648_s26 = sphi %s1724_s26, %s2066_s26   ;;  %s1644_s25 = sphi %s1722_s25, %s2070_s25   ;;  %s1640_s24 = sphi %s1720_s24, %s2069_s24  }
  0x10   : > { %2052 = sst [smem:[#allocation27_spill]] %s1656_s28  ;;  %p1155_p0 = scmp.ge.s32.totalorder %s1660_s29, 1 }
  0x11   : > { %p70_p1 = scmp.eq.s32.totalorder %s1751_s30, 0  ;;  %p241_p2 = scmp.lt.s32.totalorder %s1660_s29, 3 }
  0x12   : > { %s2053_s2 = sld [smem:[#allocation30_spill]]  ;;  %s1662_s12 = smov [#allocation13]  }
  0x13   : > { %p1759_p3 = pnand %p1155_p0, %p241_p2  ;;  %s254_s13 = sshll.u32 %s1662_s12, 4  ;;  %s255_s13 = int_to_ptr.vmem [resolvable:$true] %s254_s13 }
  0x14   : > { %p1160_p6 = scmp.ge.s32.totalorder %s1660_s29, 2  ;;  %s2056_s3 = sld [smem:[#allocation31_spill]] }
  0x15   : > { %p1251_p4 = pneg %p1759_p3  ;;  %s1663_s18 = smov 64  }
  0x16   : > { %s1664_s19 = smov 4   ;;  %s1665_s20 = smov [#allocation14]  }
  0x17   : > { %p1767_p5 = pnand %p1251_p4, %p70_p1  ;;  %s268_s21 = sshll.u32 %s1665_s20, 4  ;;  %s269_s21 = int_to_ptr.vmem [resolvable:$true] %s268_s21 }
  0x18   : > { %s252_s10 = sshll.u32 %s2053_s2, 4  ;;  %s2057_s4 = sld [smem:[#allocation32_spill]]  ;;  %s253_s10 = int_to_ptr.hbm [resolvable:$true] %s252_s10 }
  0x19   : > { %1254 = dma.hbm_to_vmem [thread:$0]  (!%p1767_p5), %s253_s10, 256, %s255_s13, [#allocation12], %s1663_s18, %s1663_s18, %s1664_s19  }
  0x1a   : > { %s266_s17 = sshll.u32 %s2056_s3, 4  ;;  %s2058_s5 = sld [smem:[#allocation33_spill]]  ;;  %s267_s17 = int_to_ptr.hbm [resolvable:$true] %s266_s17 }
  0x1b   : > { %1257 = dma.hbm_to_vmem [thread:$0]  (!%p1767_p5), %s267_s17, 256, %s269_s21, [#allocation15], %s1663_s18, %s1663_s18, %s1664_s19  }
  0x1c   : > { %s1666_s13 = smov [#allocation16]   ;;  %s1667_s16 = smov [#allocation17]  }
  0x1d   : > { %s282_s15 = sshll.u32 %s1666_s13, 4  ;;  %s296_s20 = sshll.u32 %s1667_s16, 4  ;;  %s283_s15 = int_to_ptr.vmem [resolvable:$true] %s282_s15  ;;  %s297_s20 = int_to_ptr.vmem [resolvable:$true] %s296_s20 }
  0x1e   : > { %s280_s8 = sshll.u32 %s2057_s4, 4  ;;  %s1154_s17 = sadd.s32 4294967294, %s1660_s29   ;;  %s281_s8 = int_to_ptr.hbm [resolvable:$true] %s280_s8 }
  0x1f   : > { %1260 = dma.hbm_to_vmem [thread:$0]  (!%p1767_p5), %s281_s8, 256, %s283_s15, [#allocation15], %s1663_s18, %s1663_s18, %s1664_s19  }
  0x20   : > { %s294_s10 = sshll.u32 %s2058_s5, 4  ;;  %s47_s21 = sadd.s32 1, %s1656_s28  ;;  %s295_s10 = int_to_ptr.hbm [resolvable:$true] %s294_s10 }
  0x21   : > { %1263 = dma.hbm_to_vmem [thread:$0]  (!%p1767_p5), %s295_s10, 256, %s297_s20, [#allocation18], %s1663_s18, %s1663_s18, %s1664_s19  }
  0x22   : > { %p49_p7 = scmp.ge.s32.totalorder %s47_s21, 2  ;;  %s56_s22 = sadd.s32 1, %s1648_s26 }
  0x23   : > { %p63_p8 = scmp.ne.s32.totalorder %s1648_s26, %s1644_s25  ;;  %p64_p9 = scmp.eq.s32.totalorder %s1660_s29, 0 }
  0x24   : > { %s2072_s21 = smov (%p49_p7, %s47_s21), 0  ;;  %p69_p11 = scmp.ne.s32.totalorder %s1644_s25, %s1640_s24 }
  0x25   : > { %2059 = sst [smem:[#allocation28_spill]] %s2072_s21  ;;  %p1797_p10 = por %p64_p9, %p63_p8 }
  0x26   : > { %s51_s14 = ssub.s32 %s1656_s28, %s2072_s21  ;;  %p228_p12 = scmp.eq.s32.totalorder %s1751_s30, 1 }
  0x27   : > { %p54_p13 = scmp.eq.s32.totalorder %s51_s14, 0  ;;  %p1808_p0 = por %p70_p1, %p69_p11 }
  0x28   : > { %p1812_p2 = por %p228_p12, %p63_p8  ;;  %p234_p4 = scmp.eq.s32.totalorder %s1154_s17, 1 }
  0x29   : > { %s1817_s8 = scalar_select %p54_p13, %s1648_s26, %s56_s22  }
  0x2a   : > { %p1819_p5 = por %p234_p4, %p69_p11  ;;  %p1279_p7 = scmp.lt.s32.totalorder %s1660_s29, 2 }
  0x2b   : > { %2063 = sst [smem:[#allocation29_spill]] %s1817_s8  ;;  %s313_s12 = sand.u32 1, %s1648_s26  }
  0x2c   : > { %s1162_s10 = sshll.u32 %s1656_s28, 2  ;;  %s1161_s13 = sshll.u32 %s313_s12, 2 }
  0x2d   : > { %s322_s20 = scalar_lea.hbm %s2036_s0, %s1162_s10  ;;  %s317_s2 = scalar_lea.vmem [#allocation8], %s1161_s13 }
  0x2e   : > { %s324_s14 = sshll.u32 %s322_s20, 4  ;;  %s326_s3 = sshll.u32 %s317_s2, 4  ;;  %s325_s14 = int_to_ptr.hbm [resolvable:$true] %s324_s14  ;;  %s327_s3 = int_to_ptr.vmem [resolvable:$true] %s326_s3 }
  0x2f   : > { %p1265_p8 = pnand %p1279_p7, %p1797_p10  ;;  %s342_s4 = scalar_lea.hbm %s2037_s1, %s1162_s10 }
  0x30   : > { %s333_s5 = sand.u32 1, %s1660_s29   ;;  %s314_s21 = scalar_lea.sflag [#allocation9], %s313_s12 }
  0x31   : > { %1267 = dma.hbm_to_vmem [thread:$0]  (!%p1265_p8), %s325_s14, 64, %s327_s3, %s314_s21  }
  0x32   : > { %s344_s28 = sshll.u32 %s342_s4, 4  ;;  %s337_s8 = scalar_lea.vmem [#allocation11], %s1161_s13  ;;  %s345_s28 = int_to_ptr.hbm [resolvable:$true] %s344_s28 }
  0x33   : > { %s346_s26 = sshll.u32 %s337_s8, 4  ;;  %s334_s15 = scalar_lea.sflag [#allocation12], %s333_s5  ;;  %s347_s26 = int_to_ptr.vmem [resolvable:$true] %s346_s26 }
  0x34   : > { %1270 = dma.hbm_to_vmem [thread:$0]  (!%p1265_p8), %s345_s28, 64, %s347_s26, %s334_s15  }
  0x35   : > { %355 = sbr.rel (%p1759_p3) target bundleno = 1178 (0x49a), region = 48  ;;  %s1838_s2 = sand.u32 (!%p1759_p3), 1, %s1644_s25  }
  0x36   : > { %s1166_s23 = sshll.u32 (!%p1759_p3), %s1838_s2, 2  ;;  %s358_s10 = scalar_lea.sflag (!%p1759_p3), [#allocation9], %s1838_s2 }
  0x37   : > { %s361_s12 = scalar_lea.vmem (!%p1759_p3), [#allocation8], %s1166_s23 }
  0x3a   : > { %1615 = dma.done.wait (%p1808_p0), %s358_s10, 64  }
  0x3b   : > { %1617 = vsyncadd (%p1808_p0), %s358_s10, 4294967232  ;;  %s367_s3 = sand.u32 1, %s1751_s30   ;;  %s371_s5 = scalar_lea.vmem [#allocation11], %s1166_s23 }
  0x3c   : > { %s368_s4 = scalar_lea.sflag [#allocation12], %s367_s3 }
  0x3d   : > { %1619 = dma.done.wait (%p1808_p0), %s368_s4, 64  }
  0x3e   : > { %1621 = vsyncadd (%p1808_p0), %s368_s4, 4294967232 }
  0x3f   : > { %1623 = dma.done.wait (%p70_p1), [#allocation12], 256  }
  0x40   : > { %1625 = vsyncadd (%p70_p1), [#allocation12], 4294967040 }
  0x41   : > { %1627 = dma.done.wait (%p70_p1), [#allocation15], 512  }
  0x42   : > { %1629 = vsyncadd (%p70_p1), [#allocation15], 4294966784 }
  0x43   : > { %1631 = dma.done.wait (%p70_p1), [#allocation18], 256  }
  0x44   : > { %1633 = vsyncadd (%p70_p1), [#allocation18], 4294967040  ;;  %v1224_v0 = vld [vmem:[#allocation14 + $0x8] sm:$0xff]  ;;  %v1222_v1 = vld [vmem:[#allocation13 + $0x8] sm:$0xff]  ;;  %vm450_vm0 = vcmask 261120   ;;  %vm469_vm1 = vcmask 257024  }
  0x45   : > { %502 = vmatpush.bf16.msra.mxu1 %v1224_v0  ;;  %460 = vmatpush.bf16.msra.mxu0 %v1222_v1  ;;  %v1223_v2 = vld [vmem:[#allocation14] sm:$0xff]  ;;  %v1221_v3 = vld [vmem:[#allocation13] sm:$0xff]  ;;  %v475_v4 = vld [vmem:[%s371_s5] sm:$0xf]  ;;  %vm546_vm2 = vcmask 64512   ;;  %s1668_s26 = smov 104  }
  0x46   : > { %v433_v5 = vld [vmem:[%s361_s12] sm:$0xf]  ;;  %s1669_s28 = smov 112   ;;  %s1670_s30 = smov 120   ;;  %v1226_v34 = vld [vmem:[#allocation16 + $0x8] sm:$0xff]  ;;  %v1225_v35 = vld [vmem:[#allocation16] sm:$0xff] }
  0x47   : > { %534 = vmatpush.bf16.msra.mxu2 %v1226_v34  ;;  %vm471_vm3 = vcmask 31744   ;;  %v1671_v48 = vmov -inf   ;;  %v1672_v49 = vmov 0.0   ;;  %v1673_v50 = vmov 0   ;;  %s1677_s11 = smov 8   ;;  %s1678_s21 = smov 16  }
  0x48   : > { %472 = vst.msk [vmem:[#allocation5] sm:$0xff] %vm471_vm3, %v1671_v48  ;;  %1352 = vset.pattern.permute.xlu1 %v1673_v50  ;;  %vm588_vm4 = vcmask 7168   ;;  %vm601_vm5 = vcmask 1043456   ;;  %vm675_vm6 = vcmask 15368   ;;  %vm771_vm7 = vcmask 23568   ;;  %s1679_s18 = smov 24  }
  0x49   : > { %503 = vmatpush.bf16.msra.mxu1 %v1223_v2  ;;  %461 = vmatpush.bf16.msra.mxu0 %v1221_v3  ;;  %473 = vst.msk [vmem:[#allocation6] sm:$0xff] %vm471_vm3, %v1672_v49  ;;  %v1674_v3 = vmov 1   ;;  %vm867_vm8 = vcmask 31768   ;;  %vm714_vm9 = vcmask 130112   ;;  %vm810_vm10 = vcmask 195712   ;;  %s1218_s8 = sshll.u32 %s1652_s27, 3 }
  0x4a   : > { %474 = vst.msk [vmem:[#allocation7] sm:$0xff] %vm450_vm0, %v1672_v49  ;;  %1351 = vset.pattern.permute.xlu0 %v1674_v3  ;;  %vm906_vm11 = vcmask 261312   ;;  %s1172_s13 = sshll.u32 %s1838_s2, 3  ;;  %s1003_s14 = scalar_lea.hbm %s2043_s7, %s1218_s8 }
  0x4b   : > { %535 = vmatpush.bf16.msra.mxu2 %v1225_v35  ;;  %s427_s15 = scalar_lea.vmem [#allocation19], %s1172_s13  ;;  %s1007_s10 = sshll.u32 %s1003_s14, 4  ;;  %s1008_s10 = int_to_ptr.hbm [resolvable:$true] %s1007_s10 }
  0x4c   : > { %1190 = vmatmul.msk.bf16.vlgmr.msra.gmra.mxu1 %vm450_vm0, %v475_v4  ;;  %1181 = vmatmul.msk.bf16.vlgmr.msra.gmra.mxu0 %vm450_vm0, %v433_v5  ;;  %s1005_s23 = sshll.u32 %s427_s15, 4  ;;  %s992_s27 = scalar_lea.sflag [#allocation10], %s1838_s2  ;;  %s1006_s23 = int_to_ptr.vmem [resolvable:$true] %s1005_s23 }
  0x4d   : > { %s1576_s12 = sshra.s32 %s1008_s10, 4  ;;  %s1577_s12 = int_to_ptr.hbm [resolvable:$true] %s1576_s12 }
  0x4e   : > { %1199 = vmatmul.msk.bf16.vlgmr.msra.gmra.mxu2 %vm450_vm0, %v475_v4  ;;  %s1578_s3 = scalar_lea.hbm %s1577_s12, 8  ;;  %p1583_p10 = scmp.lt.s32.totalorder %s1577_s12, %s2043_s7 }
  0x4f   : > { %v1891_v53 = vld [vmem:[#allocation5] sm:$0xff]  ;;  %p1579_p1 = scmp.ne.s32.totalorder %s1577_s12, %s1578_s3 }
  0x51   : > { %p1580_p3 = pnand %p1579_p1, %p1812_p2 }
  0x53   : > { %p1581_p9 = pneg %p1580_p3 }
  0xc9   : > { %v505_v6 = vpop.f32.mrf.mxu1  ;;  %v463_v7 = vpop.f32.mrf.mxu0 }
  0xca   : > { %v509_v8 = vpack.c.bf16 %v505_v6, %v505_v6  ;;  %v467_v9 = vmul.f32 0.35355338, %v463_v7  ;;  %v1675_v6 = vmov 2  }
  0xcc   : > { %511 = vst.msk [vmem:[#allocation3] sm:$0xf] %vm469_vm1, %v509_v8  ;;  %v468_v10 = vpack.c.bf16 %v467_v9, %v467_v9  ;;  %v1676_v8 = vmov 3  }
  0xcd   : > { %1354 = vset.pattern.permute.xlu2 %v1676_v8 }
  0xce   : > { %470 = vst.msk [vmem:[#allocation2] sm:$0xf] %vm469_vm1, %v468_v10 }
  0xd1   : > { %v507_v11 = vpop.f32.mrf.mxu1  ;;  %v465_v12 = vpop.f32.mrf.mxu0 }
  0xd2   : > { %v537_v54 = vpop.f32.mrf.mxu2 }
  0xd3   : > { %v544_v13 = vld [vmem:[#allocation3] sm:$0xf]  ;;  %v541_v56 = vpack.c.bf16 %v537_v54, %v537_v54 }
  0xd4   : > { %v814_v14 = vld [vmem:[#allocation3] sm:$0xf]  ;;  %v551_v16 = vsel %vm546_vm2, %v544_v13, 0 }
  0xd5   : > { %v718_v15 = vld [vmem:[#allocation3] sm:$0xf]  ;;  %v822_v17 = vunpack.c.l.b16 %v814_v14  ;;  %560 = vmatpush.bf16.xpose.msra.mxu3 %v551_v16  ;;  %v717_v21 = vld [vmem:[#allocation2] sm:$0xf]  ;;  %542 = vst.msk [vmem:[#allocation4] sm:$0xf] %vm469_vm1, %v541_v56 }
  0xd6   : > { %v726_v18 = vunpack.c.l.b16 %v718_v15  ;;  %v622_v19 = vld [vmem:[#allocation3] sm:$0xf]  ;;  %v621_v24 = vld [vmem:[#allocation2] sm:$0xf]  ;;  %v721_v27 = vunpack.c.l.b16 %v717_v21 }
  0xd7   : > { %v630_v20 = vunpack.c.l.b16 %v622_v19  ;;  %v823_v22 = vpack.c.b16 %v822_v17, %v822_v17  ;;  %v813_v25 = vld [vmem:[#allocation2] sm:$0xf]  ;;  %v625_v30 = vunpack.c.l.b16 %v621_v24 }
  0xd8   : > { %v727_v23 = vpack.c.b16 %v726_v18, %v726_v18  ;;  %v817_v28 = vunpack.c.l.b16 %v813_v25  ;;  %v543_v29 = vld [vmem:[#allocation2] sm:$0xf]  ;;  %v722_v31 = vpack.c.b16 %v721_v27, %v721_v27 }
  0xd9   : > { %v631_v26 = vpack.c.b16 %v630_v20, %v630_v20  ;;  %824 = vrot.lane.b32.xlu2 %v823_v22, %s1668_s26  ;;  %v626_v33 = vpack.c.b16 %v625_v30, %v625_v30 }
  0xda   : > { %728 = vrot.lane.b32.xlu1 %v727_v23, %s1669_s28  ;;  %v818_v32 = vpack.c.b16 %v817_v28, %v817_v28  ;;  %v539_v62 = vpop.f32.mrf.mxu2 }
  0xdb   : > { %632 = vrot.lane.b32.xlu0 %v631_v26, %s1670_s30 }
  0xdc   : > { %1200 = vmatmul.msk.bf16.vlgmr.msra.gmra.mxu3 %vm546_vm2, %v543_v29  ;;  %v623_v4 = vld [vmem:[#allocation4] sm:$0xf] }
  0xdd   : > { %v686_v5 = vunpack.c.l.b16 %v623_v4  ;;  %v545_v9 = vld [vmem:[#allocation4] sm:$0xf] }
  0xde   : > { %v603_v10 = vsel %vm601_vm5, %v545_v9, 0  ;;  %v719_v17 = vld [vmem:[#allocation4] sm:$0xf] }
  0xdf   : > { %v687_v7 = vpack.c.b16 %v686_v5, %v686_v5  ;;  %612 = vmatpush.bf16.msrb.mxu0 %v603_v10  ;;  %v782_v20 = vunpack.c.l.b16 %v719_v17  ;;  %v815_v24 = vld [vmem:[#allocation4] sm:$0xf] }
  0xe0   : > { %v878_v27 = vunpack.c.l.b16 %v815_v24 }
  0xe1   : > { %819 = vrot.lane.b32.xlu2 %v818_v32, %s1668_s26  ;;  %v783_v21 = vpack.c.b16 %v782_v20, %v782_v20 }
  0xe2   : > { %723 = vrot.lane.b32.xlu1 %v722_v31, %s1669_s28  ;;  %v879_v31 = vpack.c.b16 %v878_v27, %v878_v27 }
  0xe3   : > { %627 = vrot.lane.b32.xlu0 %v626_v33, %s1670_s30 }
 0x133   : > { %v825_v36 = vpop.permute.xlu2 %824 }
 0x134   : > { %v830_v41 = vsel %vm546_vm2, %v825_v36, 0 }
 0x13b   : > { %v820_v46 = vpop.permute.xlu2 %819 }
 0x14c   : > { %v729_v37 = vpop.permute.xlu1 %728 }
 0x14d   : > { %v633_v38 = vpop.permute.xlu0 %632  ;;  %v734_v39 = vsel %vm546_vm2, %v729_v37, 0 }
 0x14e   : > { %v638_v40 = vsel %vm546_vm2, %v633_v38, 0  ;;  %743 = vmatpush.bf16.xpose.msrb.mxu3 %v734_v39 }
 0x14f   : > { %647 = vmatpush.bf16.xpose.msrb.mxu1 %v638_v40 }
 0x154   : > { %v724_v42 = vpop.permute.xlu1 %723 }
 0x155   : > { %v628_v43 = vpop.permute.xlu0 %627  ;;  %1204 = vmatmul.msk.bf16.vlgmr.msrb.gmra.mxu3 %vm546_vm2, %v724_v42 }
 0x156   : > { %1202 = vmatmul.msk.bf16.vlgmr.msrb.gmra.mxu1 %vm546_vm2, %v628_v43 }
 0x157   : > { %839 = vmatpush.bf16.xpose.msra.mxu1 %v830_v41 }
 0x15f   : > { %v1881_v44 = vpop.f32.mrf.mxu3 }
 0x160   : > { %v567_v45 = vsel %vm546_vm2, %v1881_v44, -inf }
 0x161   : > { %568 = vmax.xlane.f32.xlu0 %v567_v45 }
 0x166   : > { %1206 = vmatmul.msk.bf16.vlgmr.msra.gmra.mxu1 %vm546_vm2, %v820_v46 }
 0x167   : > { %v564_v47 = vpop.f32.mrf.mxu3 }
 0x1d3   : > { %v1887_v51 = vpop.f32.mrf.mxu1 }
 0x1d4   : > { %v654_v52 = vsel %vm546_vm2, %v1887_v51, -inf  ;;  %v569_v55 = vpop.xlane.xlu0 %568 }
 0x1d5   : > { %655 = vmax.xlane.f32.xlu1 %v654_v52  ;;  %v1894_v57 = vmax.f32 %v1891_v53, %v569_v55 }
 0x1d7   : > { %v571_v59 = vsub.f32 %v1891_v53, %v1894_v57  ;;  %620 = vst.msk [vmem:[#allocation5] sm:$0xff] %vm588_vm4, %v1894_v57 }
 0x1d8   : > { %v1896_v58 = vpop.f32.mrf.mxu3 }
 0x1d9   : > { %v750_v60 = vsel %vm546_vm2, %v1896_v58, -inf }
 0x1da   : > { %751 = vmax.xlane.f32.xlu2 %v750_v60 }
 0x1db   : > { %v651_v61 = vpop.f32.mrf.mxu1 }
 0x1de   : > { %v1915_v12 = vld [vmem:[#allocation5] sm:$0xff] }
 0x1e0   : > { %v747_v63 = vpop.f32.mrf.mxu3 }
 0x1e3   : > { %v1905_v0 = vpop.f32.mrf.mxu1 }
 0x1e4   : > { %v846_v1 = vsel %vm546_vm2, %v1905_v0, -inf }
 0x1e5   : > { %847 = vmax.xlane.f32.xlu2 %v846_v1 }
 0x1eb   : > { %v843_v2 = vpop.f32.mrf.mxu1 }
 0x1ec   : > { %v582_v2 = vld [vmem:[#allocation6] sm:$0xff] }
 0x1ee   : > { %576 = vperm.xlu1 %1352, %v1894_v57  }
 0x1f6   : > { %1353 = vset.pattern.permute.xlu1 %v1675_v6 }
 0x1fd   : > { %688 = vrot.lane.b32.xlu2 %v687_v7, %s1670_s30 }
 0x248   : > { %v656_v11 = vpop.xlane.xlu1 %655 }
 0x249   : > { %v1918_v13 = vmax.f32 %v1915_v12, %v656_v11 }
 0x24b   : > { %v658_v14 = vsub.f32 %v1915_v12, %v1918_v13  ;;  %716 = vst.msk [vmem:[#allocation5] sm:$0xff] %vm675_vm6, %v1918_v13  ;;  %663 = vperm.xlu0 %1351, %v1918_v13  }
 0x24d   : > { %v752_v16 = vpop.xlane.xlu2 %751  ;;  %v659_v63 = vmul.f32 1.442695, %v658_v14 }
 0x252   : > { %v1925_v15 = vld [vmem:[#allocation5] sm:$0xff] }
 0x253   : > { %v1928_v18 = vmax.f32 %v1925_v15, %v752_v16  ;;  %1359 = vset.pattern.permute.xlu0 %v1673_v50 }
 0x255   : > { %v754_v19 = vsub.f32 %v1925_v15, %v1928_v18  ;;  %812 = vst.msk [vmem:[#allocation5] sm:$0xff] %vm771_vm7, %v1928_v18  ;;  %759 = vperm.xlu1 %1353, %v1928_v18  }
 0x258   : > { %v848_v23 = vpop.xlane.xlu2 %847 }
 0x25c   : > { %v1935_v22 = vld [vmem:[#allocation5] sm:$0xff] }
 0x25d   : > { %v1938_v25 = vmax.f32 %v1935_v22, %v848_v23  ;;  %784 = vrot.lane.b32.xlu1 %v783_v21, %s1669_s28 }
 0x25e   : > { %1355 = vset.pattern.permute.xlu1 %v1673_v50 }
 0x25f   : > { %v850_v26 = vsub.f32 %v1935_v22, %v1938_v25  ;;  %908 = vst.msk [vmem:[#allocation5] sm:$0xff] %vm867_vm8, %v1938_v25  ;;  %855 = vperm.xlu2 %1354, %v1938_v25   ;;  %v590_v22 = vld [vmem:[#allocation7] sm:$0xff] }
 0x260   : > { %v577_v28 = vpop.permute.xlu1 %576  ;;  %v689_v35 = vpop.permute.xlu2 %688 }
 0x261   : > { %v579_v29 = vsub.f32 %v1881_v44, %v577_v28  ;;  %v694_v36 = vsel %vm601_vm5, %v689_v35, 0  ;;  %v851_v5 = vmul.f32 1.442695, %v850_v26 }
 0x262   : > { %703 = vmatpush.bf16.msrb.mxu2 %v694_v36 }
 0x263   : > { %v580_v30 = vmul.f32 1.442695, %v579_v29 }
 0x265   : > { %1364 = vpow2.f32 %v580_v30 }
 0x267   : > { %880 = vrot.lane.b32.xlu2 %v879_v31, %s1668_s26  ;;  %s1582_s26 = scalar_lea.hbm %s2043_s7, 16 }
 0x268   : > { %1356 = vset.pattern.permute.xlu2 %v1674_v3  ;;  %p1584_p11 = scmp.lt.s32.totalorder %s1582_s26, %s1578_s3 }
 0x26a   : > { %p1585_p12 = por %p1584_p11, %p1583_p10 }
 0x26b   : > { %v1365_v32 = vpop.eup %1364 }
 0x26c   : > { %v597_v33 = vpack.c.bf16 %v1365_v32, %v1365_v32  ;;  %v584_v34 = vsel %vm546_vm2, %v1365_v32, 0.0  ;;  %p1586_p13 = pnand %p1585_p12, %p1581_p9 }
 0x26e   : > { %1201 = vmatmul.msk.bf16.vlgmr.msrb.gmra.mxu0 %vm546_vm2, %v597_v33 }
 0x275   : > { %585 = vadd.xlane.f32.xlu0 %v584_v34 }
 0x2b9   : > { %v856_v37 = vpop.permute.xlu2 %855 }
 0x2ba   : > { %v858_v38 = vsub.f32 %v1905_v0, %v856_v37  ;;  %v755_v0 = vmul.f32 1.442695, %v754_v19 }
 0x2bc   : > { %v859_v39 = vmul.f32 1.442695, %v858_v38 }
 0x2bd   : > { %v664_v40 = vpop.permute.xlu0 %663 }
 0x2be   : > { %1366 = vpow2.f32 %v859_v39  ;;  %v666_v41 = vsub.f32 %v1887_v51, %v664_v40 }
 0x2c0   : > { %v667_v42 = vmul.f32 1.442695, %v666_v41 }
 0x2c1   : > { %v881_v43 = vpop.permute.xlu2 %880 }
 0x2c2   : > { %1368 = vpow2.f32 %v667_v42  ;;  %v886_v44 = vsel %vm601_vm5, %v881_v43, 0 }
 0x2c3   : > { %895 = vmatpush.bf16.msra.mxu2 %v886_v44 }
 0x2c4   : > { %v1367_v45 = vpop.eup %1366 }
 0x2c5   : > { %v863_v46 = vsel %vm546_vm2, %v1367_v45, 0.0  ;;  %v876_v62 = vpack.c.bf16 %v1367_v45, %v1367_v45 }
 0x2c6   : > { %864 = vadd.xlane.f32.xlu0 %v863_v46 }
 0x2c7   : > { %v760_v47 = vpop.permute.xlu1 %759 }
 0x2c8   : > { %v1369_v48 = vpop.eup %1368  ;;  %v762_v49 = vsub.f32 %v1896_v58, %v760_v47  ;;  %v572_v58 = vmul.f32 1.442695, %v571_v59 }
 0x2c9   : > { %v671_v50 = vsel %vm546_vm2, %v1369_v48, 0.0  ;;  %v684_v52 = vpack.c.bf16 %v1369_v48, %v1369_v48 }
 0x2ca   : > { %v763_v54 = vmul.f32 1.442695, %v762_v49  ;;  %672 = vadd.xlane.f32.xlu1 %v671_v50 }
 0x2cb   : > { %1203 = vmatmul.msk.bf16.vlgmr.msrb.gmra.mxu2 %vm546_vm2, %v684_v52  ;;  %v1228_v52 = vld [vmem:[#allocation17 + $0x8] sm:$0xff] }
 0x2cc   : > { %1370 = vpow2.f32 %v763_v54  ;;  %983 = vmatpush.bf16.msra.mxu3 %v1228_v52  ;;  %v1227_v54 = vld [vmem:[#allocation17] sm:$0xff] }
 0x2cd   : > { %1372 = vpow2.f32 %v572_v58 }
 0x2ce   : > { %1374 = vpow2.f32 %v659_v63 }
 0x2cf   : > { %v785_v51 = vpop.permute.xlu1 %784  ;;  %1376 = vpow2.f32 %v755_v0 }
 0x2d0   : > { %v790_v55 = vsel %vm601_vm5, %v785_v51, 0  ;;  %1378 = vpow2.f32 %v851_v5  ;;  %984 = vmatpush.bf16.msra.mxu3 %v1227_v54 }
 0x2d1   : > { %799 = vmatpush.bf16.msra.mxu0 %v790_v55 }
 0x2d2   : > { %v1371_v56 = vpop.eup %1370 }
 0x2d3   : > { %v780_v60 = vpack.c.bf16 %v1371_v56, %v1371_v56  ;;  %v767_v61 = vsel %vm546_vm2, %v1371_v56, 0.0  ;;  %v1373_v1 = vpop.eup %1372 }
 0x2d4   : > { %768 = vadd.xlane.f32.xlu2 %v767_v61  ;;  %v583_v4 = vmul.f32 %v1373_v1, %v582_v2  ;;  %v1375_v59 = vpop.eup %1374 }
 0x2d5   : > { %1205 = vmatmul.msk.bf16.vlgmr.msra.gmra.mxu0 %vm546_vm2, %v780_v60  ;;  %v1377_v7 = vpop.eup %1376 }
 0x2d6   : > { %v1379_v11 = vpop.eup %1378 }
 0x2db   : > { %1207 = vmatmul.msk.bf16.vlgmr.msra.gmra.mxu2 %vm546_vm2, %v876_v62 }
 0x2e3   : > { %593 = vperm.xlu1 %1355, %v1373_v1  }
 0x2e8   : > { %v586_v53 = vpop.xlane.xlu0 %585 }
 0x2e9   : > { %v587_v57 = vadd.f32 %v586_v53, %v583_v4  ;;  %v1363_v4 = vld [vmem:[%s2042_s6] ss:$0 sm:$0xff] }
 0x2eb   : > { %589 = vst.msk [vmem:[#allocation6] sm:$0xff] %vm588_vm4, %v587_v57  ;;  %1357 = vset.pattern.permute.xlu1 %v1675_v6  ;;  %v614_v9 = vpop.f32.mrf.mxu0 }
 0x2ec   : > { %776 = vperm.xlu1 %1357, %v1377_v7   ;;  %680 = vperm.xlu2 %1356, %v1375_v59  }
 0x2f2   : > { %v669_v12 = vld [vmem:[#allocation6] sm:$0xff] }
 0x2f3   : > { %v616_v10 = vpop.f32.mrf.mxu0  ;;  %v670_v13 = vmul.f32 %v1375_v59, %v669_v12 }
 0x2f4   : > { %1358 = vset.pattern.permute.xlu2 %v1676_v8 }
 0x2f5   : > { %872 = vperm.xlu2 %1358, %v1379_v11  }
 0x2fd   : > { %1360 = vset.pattern.permute.xlu2 %v1674_v3 }
 0x339   : > { %v865_v3 = vpop.xlane.xlu0 %864 }
 0x33d   : > { %v673_v14 = vpop.xlane.xlu1 %672 }
 0x33e   : > { %v674_v15 = vadd.f32 %v673_v14, %v670_v13 }
 0x340   : > { %676 = vst.msk [vmem:[#allocation6] sm:$0xff] %vm675_vm6, %v674_v15 }
 0x347   : > { %v765_v16 = vld [vmem:[#allocation6] sm:$0xff]  ;;  %v769_v6 = vpop.xlane.xlu2 %768 }
 0x348   : > { %v766_v17 = vmul.f32 %v1377_v7, %v765_v16 }
 0x34a   : > { %v770_v18 = vadd.f32 %v769_v6, %v766_v17 }
 0x34c   : > { %772 = vst.msk [vmem:[#allocation6] sm:$0xff] %vm771_vm7, %v770_v18 }
 0x34e   : > { %v705_v19 = vpop.f32.mrf.mxu2 }
 0x34f   : > { %710 = vrot.lane.b32.xlu0 %v705_v19, %s1677_s11  ;;  %v681_v35 = vpop.permute.xlu2 %680 }
 0x352   : > { %v801_v20 = vpop.f32.mrf.mxu0 }
 0x353   : > { %v861_v21 = vld [vmem:[#allocation6] sm:$0xff] }
 0x354   : > { %v862_v23 = vmul.f32 %v1379_v11, %v861_v21 }
 0x355   : > { %v594_v24 = vpop.permute.xlu1 %593 }
 0x356   : > { %v866_v25 = vadd.f32 %v865_v3, %v862_v23  ;;  %v596_v26 = vmul.f32 %v594_v24, %v590_v22  ;;  %v707_v27 = vpop.f32.mrf.mxu2 }
 0x357   : > { %806 = vrot.lane.b32.xlu0 %v801_v20, %s1678_s21  ;;  %v873_v44 = vpop.permute.xlu2 %872 }
 0x358   : > { %868 = vst.msk [vmem:[#allocation6] sm:$0xff] %vm867_vm8, %v866_v25  ;;  %v618_v28 = vadd.f32 %v614_v9, %v596_v26 }
 0x35a   : > { %619 = vst.msk [vmem:[#allocation7] sm:$0xff] %vm546_vm2, %v618_v28  ;;  %v803_v29 = vpop.f32.mrf.mxu0 }
 0x35e   : > { %v897_v30 = vpop.f32.mrf.mxu2  ;;  %v777_v39 = vpop.permute.xlu1 %776 }
 0x35f   : > { %902 = vrot.lane.b32.xlu1 %v897_v30, %s1679_s18  ;;  %v932_v31 = vld [vmem:[#allocation6] sm:$0xff] }
 0x360   : > { %1380 = vrcp.f32 %v932_v31 }
 0x361   : > { %v677_v34 = vld [vmem:[#allocation7] sm:$0xff] }
 0x362   : > { %v683_v36 = vmul.f32 %v681_v35, %v677_v34 }
 0x366   : > { %v1381_v32 = vpop.eup %1380  ;;  %v899_v33 = vpop.f32.mrf.mxu2 }
 0x367   : > { %937 = vperm.xlu1 %1357, %v1381_v32   ;;  %927 = vperm.xlu2 %1360, %v1381_v32  }
 0x368   : > { %917 = vperm.xlu0 %1359, %v1381_v32  }
 0x36f   : > { %1361 = vset.pattern.permute.xlu2 %v1676_v8 }
 0x370   : > { %947 = vperm.xlu2 %1361, %v1381_v32   ;;  %1362 = vset.pattern.permute.xlu0 %v1676_v8 }
 0x3c1   : > { %v711_v37 = vpop.permute.xlu0 %710  ;;  %v928_v51 = vpop.permute.xlu2 %927 }
 0x3c2   : > { %v713_v38 = vadd.f32 %v711_v37, %v683_v36 }
 0x3c4   : > { %715 = vst.msk [vmem:[#allocation7] sm:$0xff] %vm714_vm9, %v713_v38 }
 0x3c9   : > { %v807_v42 = vpop.permute.xlu0 %806 }
 0x3ca   : > { %v948_v62 = vpop.permute.xlu2 %947 }
 0x3cb   : > { %v773_v40 = vld [vmem:[#allocation7] sm:$0xff] }
 0x3cc   : > { %v779_v41 = vmul.f32 %v777_v39, %v773_v40 }
 0x3ce   : > { %v809_v43 = vadd.f32 %v807_v42, %v779_v41 }
 0x3d0   : > { %811 = vst.msk [vmem:[#allocation7] sm:$0xff] %vm810_vm10, %v809_v43 }
 0x3d1   : > { %v903_v8 = vpop.permute.xlu1 %902 }
 0x3d7   : > { %v869_v45 = vld [vmem:[#allocation7] sm:$0xff] }
 0x3d8   : > { %v875_v46 = vmul.f32 %v873_v44, %v869_v45 }
 0x3d9   : > { %v938_v60 = vpop.permute.xlu1 %937 }
 0x3da   : > { %v905_v47 = vadd.f32 %v903_v8, %v875_v46  ;;  %v918_v49 = vpop.permute.xlu0 %917 }
 0x3dc   : > { %907 = vst.msk [vmem:[#allocation7] sm:$0xff] %vm906_vm11, %v905_v47 }
 0x3e3   : > { %v914_v48 = vld [vmem:[#allocation7] sm:$0xff] }
 0x3e4   : > { %v920_v50 = vmul.f32 %v918_v49, %v914_v48 }
 0x3e6   : > { %921 = vst.msk [vmem:[#allocation7] sm:$0xff] %vm546_vm2, %v920_v50 }
 0x3ed   : > { %v924_v55 = vld [vmem:[#allocation7] sm:$0xff] }
 0x3ee   : > { %v930_v56 = vmul.f32 %v928_v51, %v924_v55 }
 0x3f0   : > { %931 = vst.msk [vmem:[#allocation7] sm:$0xff] %vm714_vm9, %v930_v56 }
 0x3f7   : > { %v934_v61 = vld [vmem:[#allocation7] sm:$0xff] }
 0x3f8   : > { %v940_v58 = vmul.f32 %v938_v60, %v934_v61 }
 0x3fa   : > { %941 = vst.msk [vmem:[#allocation7] sm:$0xff] %vm810_vm10, %v940_v58 }
 0x401   : > { %v944_v63 = vld [vmem:[#allocation7] sm:$0xff] }
 0x402   : > { %v950_v0 = vmul.f32 %v948_v62, %v944_v63 }
 0x404   : > { %951 = vst.msk [vmem:[#allocation7] sm:$0xff] %vm906_vm11, %v950_v0 }
 0x40b   : > { %v952_v1 = vld [vmem:[#allocation7] sm:$0xff] }
 0x40c   : > { %v953_v2 = vpack.c.bf16 %v952_v1, %v952_v1 }
 0x40e   : > { %1216 = vmatmul.msk.bf16.vlgmr.msra.gmra.mxu3 %vm450_vm0, %v953_v2 }
 0x491   : > { %v986_v53 = vpop.f32.mrf.mxu3 }
 0x492   : > { %v987_v57 = vadd.f32 %v1363_v4, %v986_v53 }
 0x494   : > { %990 = vst.msk [vmem:[%s427_s15] sm:$0xff] %vm450_vm0, %v987_v57 }
 0x495   : > { %1589 = shalt.err (!%p1586_p13)
}
 0x496   : > { %1249 = dma.vmem_to_hbm [thread:$0]  (%p1812_p2), %s1006_s23, 128, %s1008_s10, %s992_s27  }
 0x499   : > { %v988_v59 = vpop.f32.mrf.mxu3 }
 0x49a PF: > { %s1019_s2 = sand.u32 1, %s1640_s24   ;;  %p1272_p0 = pnand %p1160_p6, %p1819_p5 }
 0x49b   : > { %s1020_s11 = scalar_lea.sflag [#allocation10], %s1019_s2 }
 0x49c   : > { %p1273_p4 = pneg %p1272_p0 }
 0x49e   : > { %1635 = dma.done.wait (%p1273_p4), %s1020_s11, 128  }
 0x49f   : > { %1637 = vsyncadd (%p1273_p4), %s1020_s11, 4294967168  ;;  %s28_s29 = sadd.s32 1, %s1660_s29   ;;  %s2065_s21 = sld [smem:[#allocation26_spill]] }
 0x4a0   : > { %p25_p7 = scmp.ge.s32.totalorder %s28_s29, 4   ;;  %s2066_s26 = sld [smem:[#allocation29_spill]] }
 0x4a1   : > { %s2067_s27 = sld [smem:[#allocation27_spill]]  ;;  %s2069_s24 = smov %s1644_s25 }
 0x4a2   : > { %s2068_s28 = sld [smem:[#allocation28_spill]]  ;;  %27 = sbr.rel (!%p25_p7) target bundleno = 15 (0xf), region = 130 }
 0x4a5   : > { %s2070_s25 = smov %s2065_s21 }
 0x4a7   :  { %1026 = vsyncpa [#allocation9], 1 }
 0x4a8   :  { %1028 = vsyncpa [#allocation9 + $0x1], 1 }
 0x4a9   :  { %1029 = vsyncpa [#allocation12], 1 }
 0x4aa   :  { %1031 = vsyncpa [#allocation12 + $0x1], 1 }
 0x4ab   :  { %1032 = vsyncpa [#allocation15], 1 }
 0x4ac   :  { %1033 = vsyncpa [#allocation18], 1 }
 0x4ad   :  { %1034 = vsyncpa [#allocation10], 1 }
 0x4ae   :  { %1036 = vsyncpa [#allocation10 + $0x1], 1 }

// kernel: tpu_custom_call.1
= control target key start
LH: loop header
LB: loop body
LE: loop exit
PB: predicated region body
PF: predicated region fallthrough
CT: control target
= control target key end

     0   :  { %s2036_s0 = inlined_call_operand.hbm [shape: bf16[2,8,32], index: 0, kind: input, shape index: {}]   ;;  %s2037_s1 = inlined_call_operand.hbm [shape: bf16[2,8,32], index: 1, kind: input, shape index: {}]   ;;  %s2038_s2 = inlined_call_operand.hbm [shape: bf16[32,32], index: 2, kind: input, shape index: {}]   ;;  %s2039_s3 = inlined_call_operand.hbm [shape: bf16[32,32], index: 3, kind: input, shape index: {}]   ;;  %s2040_s4 = inlined_call_operand.hbm [shape: bf16[32,32], index: 4, kind: input, shape index: {}]   ;;  %s2041_s5 = inlined_call_operand.hbm [shape: bf16[32,32], index: 5, kind: input, shape index: {}]   ;;  %s2042_s6 = inlined_call_operand.vmem [shape: f32[1,32], index: 6, kind: input, shape index: {}]   ;;  %s2043_s7 = inlined_call_operand.hbm [shape: f32[2,8,32], index: 7, kind: output, shape index: {}]  }
   0x1   :  { %2047 = sst [smem:[#allocation30_spill]] %s2038_s2 }
   0x2   :  { %2048 = sst [smem:[#allocation31_spill]] %s2039_s3 }
   0x3   :  { %2049 = sst [smem:[#allocation32_spill]] %s2040_s4 }
   0x4   :  { %2050 = sst [smem:[#allocation33_spill]] %s2041_s5 }
   0x5   :  { %12 = vsyncpa [#allocation9], 0 }
   0x6   :  { %14 = vsyncpa [#allocation9 + $0x1], 0 }
   0x7   :  { %15 = vsyncpa [#allocation12], 0 }
   0x8   :  { %17 = vsyncpa [#allocation12 + $0x1], 0 }
   0x9   :  { %18 = vsyncpa [#allocation15], 0 }
   0xa   :  { %19 = vsyncpa [#allocation18], 0 }
   0xb   :  { %20 = vsyncpa [#allocation10], 0 }
   0xc   :  { %22 = vsyncpa [#allocation10 + $0x1], 0  ;;  %s1720_s24 = smov 0   ;;  %s1722_s25 = smov 0  }
   0xd   :  { %s1724_s26 = smov 0   ;;  %s1726_s27 = smov 0  }
   0xe   :  { %s1728_s28 = smov 0   ;;  %s1730_s29 = smov 0  }
   0xf LB: > { %2051 = sst [smem:[#allocation26_spill]] %s1648_s26  ;;  %s1751_s30 = sadd.s32 4294967295, %s1660_s29   ;;  %s1660_s29 = sphi %s1730_s29, %s28_s29   ;;  %s1656_s28 = sphi %s1728_s28, %s2068_s28   ;;  %s1652_s27 = sphi %s1726_s27, %s2067_s27   ;;  %s1648_s26 = sphi %s1724_s26, %s2066_s26   ;;  %s1644_s25 = sphi %s1722_s25, %s2070_s25   ;;  %s1640_s24 = sphi %s1720_s24, %s2069_s24  }
  0x10   : > { %2052 = sst [smem:[#allocation27_spill]] %s1656_s28  ;;  %p1155_p0 = scmp.ge.s32.totalorder %s1660_s29, 1 }
  0x11   : > { %p70_p1 = scmp.eq.s32.totalorder %s1751_s30, 0  ;;  %p241_p2 = scmp.lt.s32.totalorder %s1660_s29, 3 }
  0x12   : > { %s2053_s2 = sld [smem:[#allocation30_spill]]  ;;  %s1662_s12 = smov [#allocation13]  }
  0x13   : > { %p1759_p3 = pnand %p1155_p0, %p241_p2  ;;  %s254_s13 = sshll.u32 %s1662_s12, 4  ;;  %s255_s13 = int_to_ptr.vmem [resolvable:$true] %s254_s13 }
  0x14   : > { %p1160_p6 = scmp.ge.s32.totalorder %s1660_s29, 2  ;;  %s2056_s3 = sld [smem:[#allocation31_spill]] }
  0x15   : > { %p1251_p4 = pneg %p1759_p3  ;;  %s1663_s18 = smov 64  }
  0x16   : > { %s1664_s19 = smov 4   ;;  %s1665_s20 = smov [#allocation14]  }
  0x17   : > { %p1767_p5 = pnand %p1251_p4, %p70_p1  ;;  %s268_s21 = sshll.u32 %s1665_s20, 4  ;;  %s269_s21 = int_to_ptr.vmem [resolvable:$true] %s268_s21 }
  0x18   : > { %s252_s10 = sshll.u32 %s2053_s2, 4  ;;  %s2057_s4 = sld [smem:[#allocation32_spill]]  ;;  %s253_s10 = int_to_ptr.hbm [resolvable:$true] %s252_s10 }
  0x19   : > { %1254 = dma.hbm_to_vmem [thread:$0]  (!%p1767_p5), %s253_s10, 256, %s255_s13, [#allocation12], %s1663_s18, %s1663_s18, %s1664_s19  }
  0x1a   : > { %s266_s17 = sshll.u32 %s2056_s3, 4  ;;  %s2058_s5 = sld [smem:[#allocation33_spill]]  ;;  %s267_s17 = int_to_ptr.hbm [resolvable:$true] %s266_s17 }
  0x1b   : > { %1257 = dma.hbm_to_vmem [thread:$0]  (!%p1767_p5), %s267_s17, 256, %s269_s21, [#allocation15], %s1663_s18, %s1663_s18, %s1664_s19  }
  0x1c   : > { %s1666_s13 = smov [#allocation16]   ;;  %s1667_s16 = smov [#allocation17]  }
  0x1d   : > { %s282_s15 = sshll.u32 %s1666_s13, 4  ;;  %s296_s20 = sshll.u32 %s1667_s16, 4  ;;  %s283_s15 = int_to_ptr.vmem [resolvable:$true] %s282_s15  ;;  %s297_s20 = int_to_ptr.vmem [resolvable:$true] %s296_s20 }
  0x1e   : > { %s280_s8 = sshll.u32 %s2057_s4, 4  ;;  %s1154_s17 = sadd.s32 4294967294, %s1660_s29   ;;  %s281_s8 = int_to_ptr.hbm [resolvable:$true] %s280_s8 }
  0x1f   : > { %1260 = dma.hbm_to_vmem [thread:$0]  (!%p1767_p5), %s281_s8, 256, %s283_s15, [#allocation15], %s1663_s18, %s1663_s18, %s1664_s19  }
  0x20   : > { %s294_s10 = sshll.u32 %s2058_s5, 4  ;;  %s47_s21 = sadd.s32 1, %s1656_s28  ;;  %s295_s10 = int_to_ptr.hbm [resolvable:$true] %s294_s10 }
  0x21   : > { %1263 = dma.hbm_to_vmem [thread:$0]  (!%p1767_p5), %s295_s10, 256, %s297_s20, [#allocation18], %s1663_s18, %s1663_s18, %s1664_s19  }
  0x22   : > { %p49_p7 = scmp.ge.s32.totalorder %s47_s21, 2  ;;  %s56_s22 = sadd.s32 1, %s1648_s26 }
  0x23   : > { %p63_p8 = scmp.ne.s32.totalorder %s1648_s26, %s1644_s25  ;;  %p64_p9 = scmp.eq.s32.totalorder %s1660_s29, 0 }
  0x24   : > { %s2072_s21 = smov (%p49_p7, %s47_s21), 0  ;;  %p69_p11 = scmp.ne.s32.totalorder %s1644_s25, %s1640_s24 }
  0x25   : > { %2059 = sst [smem:[#allocation28_spill]] %s2072_s21  ;;  %p1797_p10 = por %p64_p9, %p63_p8 }
  0x26   : > { %s51_s14 = ssub.s32 %s1656_s28, %s2072_s21  ;;  %p228_p12 = scmp.eq.s32.totalorder %s1751_s30, 1 }
  0x27   : > { %p54_p13 = scmp.eq.s32.totalorder %s51_s14, 0  ;;  %p1808_p0 = por %p70_p1, %p69_p11 }
  0x28   : > { %p1812_p2 = por %p228_p12, %p63_p8  ;;  %p234_p4 = scmp.eq.s32.totalorder %s1154_s17, 1 }
  0x29   : > { %s1817_s8 = scalar_select %p54_p13, %s1648_s26, %s56_s22  }
  0x2a   : > { %p1819_p5 = por %p234_p4, %p69_p11  ;;  %p1279_p7 = scmp.lt.s32.totalorder %s1660_s29, 2 }
  0x2b   : > { %2063 = sst [smem:[#allocation29_spill]] %s1817_s8  ;;  %s313_s12 = sand.u32 1, %s1648_s26  }
  0x2c   : > { %s1162_s10 = sshll.u32 %s1656_s28, 2  ;;  %s1161_s13 = sshll.u32 %s313_s12, 2 }
  0x2d   : > { %s322_s20 = scalar_lea.hbm %s2036_s0, %s1162_s10  ;;  %s317_s2 = scalar_lea.vmem [#allocation8], %s1161_s13 }
  0x2e   : > { %s324_s14 = sshll.u32 %s322_s20, 4  ;;  %s326_s3 = sshll.u32 %s317_s2, 4  ;;  %s325_s14 = int_to_ptr.hbm [resolvable:$true] %s324_s14  ;;  %s327_s3 = int_to_ptr.vmem [resolvable:$true] %s326_s3 }
  0x2f   : > { %p1265_p8 = pnand %p1279_p7, %p1797_p10  ;;  %s342_s4 = scalar_lea.hbm %s2037_s1, %s1162_s10 }
  0x30   : > { %s333_s5 = sand.u32 1, %s1660_s29   ;;  %s314_s21 = scalar_lea.sflag [#allocation9], %s313_s12 }
  0x31   : > { %1267 = dma.hbm_to_vmem [thread:$0]  (!%p1265_p8), %s325_s14, 64, %s327_s3, %s314_s21  }
  0x32   : > { %s344_s28 = sshll.u32 %s342_s4, 4  ;;  %s337_s8 = scalar_lea.vmem [#allocation11], %s1161_s13  ;;  %s345_s28 = int_to_ptr.hbm [resolvable:$true] %s344_s28 }
  0x33   : > { %s346_s26 = sshll.u32 %s337_s8, 4  ;;  %s334_s15 = scalar_lea.sflag [#allocation12], %s333_s5  ;;  %s347_s26 = int_to_ptr.vmem [resolvable:$true] %s346_s26 }
  0x34   : > { %1270 = dma.hbm_to_vmem [thread:$0]  (!%p1265_p8), %s345_s28, 64, %s347_s26, %s334_s15  }
  0x35   : > { %355 = sbr.rel (%p1759_p3) target bundleno = 1178 (0x49a), region = 48  ;;  %s1838_s2 = sand.u32 (!%p1759_p3), 1, %s1644_s25  }
  0x36   : > { %s1166_s23 = sshll.u32 (!%p1759_p3), %s1838_s2, 2  ;;  %s358_s10 = scalar_lea.sflag (!%p1759_p3), [#allocation9], %s1838_s2 }
  0x37   : > { %s361_s12 = scalar_lea.vmem (!%p1759_p3), [#allocation8], %s1166_s23 }
  0x3a   : > { %1615 = dma.done.wait (%p1808_p0), %s358_s10, 64  }
  0x3b   : > { %1617 = vsyncadd (%p1808_p0), %s358_s10, 4294967232  ;;  %s367_s3 = sand.u32 1, %s1751_s30   ;;  %s371_s5 = scalar_lea.vmem [#allocation11], %s1166_s23 }
  0x3c   : > { %s368_s4 = scalar_lea.sflag [#allocation12], %s367_s3 }
  0x3d   : > { %1619 = dma.done.wait (%p1808_p0), %s368_s4, 64  }
  0x3e   : > { %1621 = vsyncadd (%p1808_p0), %s368_s4, 4294967232 }
  0x3f   : > { %1623 = dma.done.wait (%p70_p1), [#allocation12], 256  }
  0x40   : > { %1625 = vsyncadd (%p70_p1), [#allocation12], 4294967040 }
  0x41   : > { %1627 = dma.done.wait (%p70_p1), [#allocation15], 512  }
  0x42   : > { %1629 = vsyncadd (%p70_p1), [#allocation15], 4294966784 }
  0x43   : > { %1631 = dma.done.wait (%p70_p1), [#allocation18], 256  }
  0x44   : > { %1633 = vsyncadd (%p70_p1), [#allocation18], 4294967040  ;;  %v1224_v0 = vld [vmem:[#allocation14 + $0x8] sm:$0xff]  ;;  %v1222_v1 = vld [vmem:[#allocation13 + $0x8] sm:$0xff]  ;;  %vm450_vm0 = vcmask 261120   ;;  %vm469_vm1 = vcmask 257024  }
  0x45   : > { %502 = vmatpush.bf16.msra.mxu1 %v1224_v0  ;;  %460 = vmatpush.bf16.msra.mxu0 %v1222_v1  ;;  %v1223_v2 = vld [vmem:[#allocation14] sm:$0xff]  ;;  %v1221_v3 = vld [vmem:[#allocation13] sm:$0xff]  ;;  %v475_v4 = vld [vmem:[%s371_s5] sm:$0xf]  ;;  %vm546_vm2 = vcmask 64512   ;;  %s1668_s26 = smov 104  }
  0x46   : > { %v433_v5 = vld [vmem:[%s361_s12] sm:$0xf]  ;;  %s1669_s28 = smov 112   ;;  %s1670_s30 = smov 120   ;;  %v1226_v34 = vld [vmem:[#allocation16 + $0x8] sm:$0xff]  ;;  %v1225_v35 = vld [vmem:[#allocation16] sm:$0xff] }
  0x47   : > { %534 = vmatpush.bf16.msra.mxu2 %v1226_v34  ;;  %vm471_vm3 = vcmask 31744   ;;  %v1671_v48 = vmov -inf   ;;  %v1672_v49 = vmov 0.0   ;;  %v1673_v50 = vmov 0   ;;  %s1677_s11 = smov 8   ;;  %s1678_s21 = smov 16  }
  0x48   : > { %472 = vst.msk [vmem:[#allocation5] sm:$0xff] %vm471_vm3, %v1671_v48  ;;  %1352 = vset.pattern.permute.xlu1 %v1673_v50  ;;  %vm588_vm4 = vcmask 7168   ;;  %vm601_vm5 = vcmask 1043456   ;;  %vm675_vm6 = vcmask 15368   ;;  %vm771_vm7 = vcmask 23568   ;;  %s1679_s18 = smov 24  }
  0x49   : > { %503 = vmatpush.bf16.msra.mxu1 %v1223_v2  ;;  %461 = vmatpush.bf16.msra.mxu0 %v1221_v3  ;;  %473 = vst.msk [vmem:[#allocation6] sm:$0xff] %vm471_vm3, %v1672_v49  ;;  %v1674_v3 = vmov 1   ;;  %vm867_vm8 = vcmask 31768   ;;  %vm714_vm9 = vcmask 130112   ;;  %vm810_vm10 = vcmask 195712   ;;  %s1218_s8 = sshll.u32 %s1652_s27, 3 }
  0x4a   : > { %474 = vst.msk [vmem:[#allocation7] sm:$0xff] %vm450_vm0, %v1672_v49  ;;  %1351 = vset.pattern.permute.xlu0 %v1674_v3  ;;  %vm906_vm11 = vcmask 261312   ;;  %s1172_s13 = sshll.u32 %s1838_s2, 3  ;;  %s1003_s14 = scalar_lea.hbm %s2043_s7, %s1218_s8 }
  0x4b   : > { %535 = vmatpush.bf16.msra.mxu2 %v1225_v35  ;;  %s427_s15 = scalar_lea.vmem [#allocation19], %s1172_s13  ;;  %s1007_s10 = sshll.u32 %s1003_s14, 4  ;;  %s1008_s10 = int_to_ptr.hbm [resolvable:$true] %s1007_s10 }
  0x4c   : > { %1190 = vmatmul.msk.bf16.vlgmr.msra.gmra.mxu1 %vm450_vm0, %v475_v4  ;;  %1181 = vmatmul.msk.bf16.vlgmr.msra.gmra.mxu0 %vm450_vm0, %v433_v5  ;;  %s1005_s23 = sshll.u32 %s427_s15, 4  ;;  %s992_s27 = scalar_lea.sflag [#allocation10], %s1838_s2  ;;  %s1006_s23 = int_to_ptr.vmem [resolvable:$true] %s1005_s23 }
  0x4d   : > { %s1576_s12 = sshra.s32 %s1008_s10, 4  ;;  %s1577_s12 = int_to_ptr.hbm [resolvable:$true] %s1576_s12 }
  0x4e   : > { %1199 = vmatmul.msk.bf16.vlgmr.msra.gmra.mxu2 %vm450_vm0, %v475_v4  ;;  %s1578_s3 = scalar_lea.hbm %s1577_s12, 8  ;;  %p1583_p10 = scmp.lt.s32.totalorder %s1577_s12, %s2043_s7 }
  0x4f   : > { %v1891_v53 = vld [vmem:[#allocation5] sm:$0xff]  ;;  %p1579_p1 = scmp.ne.s32.totalorder %s1577_s12, %s1578_s3 }
  0x51   : > { %p1580_p3 = pnand %p1579_p1, %p1812_p2 }
  0x53   : > { %p1581_p9 = pneg %p1580_p3 }
  0xc9   : > { %v505_v6 = vpop.f32.mrf.mxu1  ;;  %v463_v7 = vpop.f32.mrf.mxu0 }
  0xca   : > { %v509_v8 = vpack.c.bf16 %v505_v6, %v505_v6  ;;  %v467_v9 = vmul.f32 0.35355338, %v463_v7  ;;  %v1675_v6 = vmov 2  }
  0xcc   : > { %511 = vst.msk [vmem:[#allocation3] sm:$0xf] %vm469_vm1, %v509_v8  ;;  %v468_v10 = vpack.c.bf16 %v467_v9, %v467_v9  ;;  %v1676_v8 = vmov 3  }
  0xcd   : > { %1354 = vset.pattern.permute.xlu2 %v1676_v8 }
  0xce   : > { %470 = vst.msk [vmem:[#allocation2] sm:$0xf] %vm469_vm1, %v468_v10 }
  0xd1   : > { %v507_v11 = vpop.f32.mrf.mxu1  ;;  %v465_v12 = vpop.f32.mrf.mxu0 }
  0xd2   : > { %v537_v54 = vpop.f32.mrf.mxu2 }
  0xd3   : > { %v544_v13 = vld [vmem:[#allocation3] sm:$0xf]  ;;  %v541_v56 = vpack.c.bf16 %v537_v54, %v537_v54 }
  0xd4   : > { %v814_v14 = vld [vmem:[#allocation3] sm:$0xf]  ;;  %v551_v16 = vsel %vm546_vm2, %v544_v13, 0 }
  0xd5   : > { %v718_v15 = vld [vmem:[#allocation3] sm:$0xf]  ;;  %v822_v17 = vunpack.c.l.b16 %v814_v14  ;;  %560 = vmatpush.bf16.xpose.msra.mxu3 %v551_v16  ;;  %v717_v21 = vld [vmem:[#allocation2] sm:$0xf]  ;;  %542 = vst.msk [vmem:[#allocation4] sm:$0xf] %vm469_vm1, %v541_v56 }
  0xd6   : > { %v726_v18 = vunpack.c.l.b16 %v718_v15  ;;  %v622_v19 = vld [vmem:[#allocation3] sm:$0xf]  ;;  %v621_v24 = vld [vmem:[#allocation2] sm:$0xf]  ;;  %v721_v27 = vunpack.c.l.b16 %v717_v21 }
  0xd7   : > { %v630_v20 = vunpack.c.l.b16 %v622_v19  ;;  %v823_v22 = vpack.c.b16 %v822_v17, %v822_v17  ;;  %v813_v25 = vld [vmem:[#allocation2] sm:$0xf]  ;;  %v625_v30 = vunpack.c.l.b16 %v621_v24 }
  0xd8   : > { %v727_v23 = vpack.c.b16 %v726_v18, %v726_v18  ;;  %v817_v28 = vunpack.c.l.b16 %v813_v25  ;;  %v543_v29 = vld [vmem:[#allocation2] sm:$0xf]  ;;  %v722_v31 = vpack.c.b16 %v721_v27, %v721_v27 }
  0xd9   : > { %v631_v26 = vpack.c.b16 %v630_v20, %v630_v20  ;;  %824 = vrot.lane.b32.xlu2 %v823_v22, %s1668_s26  ;;  %v626_v33 = vpack.c.b16 %v625_v30, %v625_v30 }
  0xda   : > { %728 = vrot.lane.b32.xlu1 %v727_v23, %s1669_s28  ;;  %v818_v32 = vpack.c.b16 %v817_v28, %v817_v28  ;;  %v539_v62 = vpop.f32.mrf.mxu2 }
  0xdb   : > { %632 = vrot.lane.b32.xlu0 %v631_v26, %s1670_s30 }
  0xdc   : > { %1200 = vmatmul.msk.bf16.vlgmr.msra.gmra.mxu3 %vm546_vm2, %v543_v29  ;;  %v623_v4 = vld [vmem:[#allocation4] sm:$0xf] }
  0xdd   : > { %v686_v5 = vunpack.c.l.b16 %v623_v4  ;;  %v545_v9 = vld [vmem:[#allocation4] sm:$0xf] }
  0xde   : > { %v603_v10 = vsel %vm601_vm5, %v545_v9, 0  ;;  %v719_v17 = vld [vmem:[#allocation4] sm:$0xf] }
  0xdf   : > { %v687_v7 = vpack.c.b16 %v686_v5, %v686_v5  ;;  %612 = vmatpush.bf16.msrb.mxu0 %v603_v10  ;;  %v782_v20 = vunpack.c.l.b16 %v719_v17  ;;  %v815_v24 = vld [vmem:[#allocation4] sm:$0xf] }
  0xe0   : > { %v878_v27 = vunpack.c.l.b16 %v815_v24 }
  0xe1   : > { %819 = vrot.lane.b32.xlu2 %v818_v32, %s1668_s26  ;;  %v783_v21 = vpack.c.b16 %v782_v20, %v782_v20 }
  0xe2   : > { %723 = vrot.lane.b32.xlu1 %v722_v31, %s1669_s28  ;;  %v879_v31 = vpack.c.b16 %v878_v27, %v878_v27 }
  0xe3   : > { %627 = vrot.lane.b32.xlu0 %v626_v33, %s1670_s30 }
 0x133   : > { %v825_v36 = vpop.permute.xlu2 %824 }
 0x134   : > { %v830_v41 = vsel %vm546_vm2, %v825_v36, 0 }
 0x13b   : > { %v820_v46 = vpop.permute.xlu2 %819 }
 0x14c   : > { %v729_v37 = vpop.permute.xlu1 %728 }
 0x14d   : > { %v633_v38 = vpop.permute.xlu0 %632  ;;  %v734_v39 = vsel %vm546_vm2, %v729_v37, 0 }
 0x14e   : > { %v638_v40 = vsel %vm546_vm2, %v633_v38, 0  ;;  %743 = vmatpush.bf16.xpose.msrb.mxu3 %v734_v39 }
 0x14f   : > { %647 = vmatpush.bf16.xpose.msrb.mxu1 %v638_v40 }
 0x154   : > { %v724_v42 = vpop.permute.xlu1 %723 }
 0x155   : > { %v628_v43 = vpop.permute.xlu0 %627  ;;  %1204 = vmatmul.msk.bf16.vlgmr.msrb.gmra.mxu3 %vm546_vm2, %v724_v42 }
 0x156   : > { %1202 = vmatmul.msk.bf16.vlgmr.msrb.gmra.mxu1 %vm546_vm2, %v628_v43 }
 0x157   : > { %839 = vmatpush.bf16.xpose.msra.mxu1 %v830_v41 }
 0x15f   : > { %v1881_v44 = vpop.f32.mrf.mxu3 }
 0x160   : > { %v567_v45 = vsel %vm546_vm2, %v1881_v44, -inf }
 0x161   : > { %568 = vmax.xlane.f32.xlu0 %v567_v45 }
 0x166   : > { %1206 = vmatmul.msk.bf16.vlgmr.msra.gmra.mxu1 %vm546_vm2, %v820_v46 }
 0x167   : > { %v564_v47 = vpop.f32.mrf.mxu3 }
 0x1d3   : > { %v1887_v51 = vpop.f32.mrf.mxu1 }
 0x1d4   : > { %v654_v52 = vsel %vm546_vm2, %v1887_v51, -inf  ;;  %v569_v55 = vpop.xlane.xlu0 %568 }
 0x1d5   : > { %655 = vmax.xlane.f32.xlu1 %v654_v52  ;;  %v1894_v57 = vmax.f32 %v1891_v53, %v569_v55 }
 0x1d7   : > { %v571_v59 = vsub.f32 %v1891_v53, %v1894_v57  ;;  %620 = vst.msk [vmem:[#allocation5] sm:$0xff] %vm588_vm4, %v1894_v57 }
 0x1d8   : > { %v1896_v58 = vpop.f32.mrf.mxu3 }
 0x1d9   : > { %v750_v60 = vsel %vm546_vm2, %v1896_v58, -inf }
 0x1da   : > { %751 = vmax.xlane.f32.xlu2 %v750_v60 }
 0x1db   : > { %v651_v61 = vpop.f32.mrf.mxu1 }
 0x1de   : > { %v1915_v12 = vld [vmem:[#allocation5] sm:$0xff] }
 0x1e0   : > { %v747_v63 = vpop.f32.mrf.mxu3 }
 0x1e3   : > { %v1905_v0 = vpop.f32.mrf.mxu1 }
 0x1e4   : > { %v846_v1 = vsel %vm546_vm2, %v1905_v0, -inf }
 0x1e5   : > { %847 = vmax.xlane.f32.xlu2 %v846_v1 }
 0x1eb   : > { %v843_v2 = vpop.f32.mrf.mxu1 }
 0x1ec   : > { %v582_v2 = vld [vmem:[#allocation6] sm:$0xff] }
 0x1ee   : > { %576 = vperm.xlu1 %1352, %v1894_v57  }
 0x1f6   : > { %1353 = vset.pattern.permute.xlu1 %v1675_v6 }
 0x1fd   : > { %688 = vrot.lane.b32.xlu2 %v687_v7, %s1670_s30 }
 0x248   : > { %v656_v11 = vpop.xlane.xlu1 %655 }
 0x249   : > { %v1918_v13 = vmax.f32 %v1915_v12, %v656_v11 }
 0x24b   : > { %v658_v14 = vsub.f32 %v1915_v12, %v1918_v13  ;;  %716 = vst.msk [vmem:[#allocation5] sm:$0xff] %vm675_vm6, %v1918_v13  ;;  %663 = vperm.xlu0 %1351, %v1918_v13  }
 0x24d   : > { %v752_v16 = vpop.xlane.xlu2 %751  ;;  %v659_v63 = vmul.f32 1.442695, %v658_v14 }
 0x252   : > { %v1925_v15 = vld [vmem:[#allocation5] sm:$0xff] }
 0x253   : > { %v1928_v18 = vmax.f32 %v1925_v15, %v752_v16  ;;  %1359 = vset.pattern.permute.xlu0 %v1673_v50 }
 0x255   : > { %v754_v19 = vsub.f32 %v1925_v15, %v1928_v18  ;;  %812 = vst.msk [vmem:[#allocation5] sm:$0xff] %vm771_vm7, %v1928_v18  ;;  %759 = vperm.xlu1 %1353, %v1928_v18  }
 0x258   : > { %v848_v23 = vpop.xlane.xlu2 %847 }
 0x25c   : > { %v1935_v22 = vld [vmem:[#allocation5] sm:$0xff] }
 0x25d   : > { %v1938_v25 = vmax.f32 %v1935_v22, %v848_v23  ;;  %784 = vrot.lane.b32.xlu1 %v783_v21, %s1669_s28 }
 0x25e   : > { %1355 = vset.pattern.permute.xlu1 %v1673_v50 }
 0x25f   : > { %v850_v26 = vsub.f32 %v1935_v22, %v1938_v25  ;;  %908 = vst.msk [vmem:[#allocation5] sm:$0xff] %vm867_vm8, %v1938_v25  ;;  %855 = vperm.xlu2 %1354, %v1938_v25   ;;  %v590_v22 = vld [vmem:[#allocation7] sm:$0xff] }
 0x260   : > { %v577_v28 = vpop.permute.xlu1 %576  ;;  %v689_v35 = vpop.permute.xlu2 %688 }
 0x261   : > { %v579_v29 = vsub.f32 %v1881_v44, %v577_v28  ;;  %v694_v36 = vsel %vm601_vm5, %v689_v35, 0  ;;  %v851_v5 = vmul.f32 1.442695, %v850_v26 }
 0x262   : > { %703 = vmatpush.bf16.msrb.mxu2 %v694_v36 }
 0x263   : > { %v580_v30 = vmul.f32 1.442695, %v579_v29 }
 0x265   : > { %1364 = vpow2.f32 %v580_v30 }
 0x267   : > { %880 = vrot.lane.b32.xlu2 %v879_v31, %s1668_s26  ;;  %s1582_s26 = scalar_lea.hbm %s2043_s7, 16 }
 0x268   : > { %1356 = vset.pattern.permute.xlu2 %v1674_v3  ;;  %p1584_p11 = scmp.lt.s32.totalorder %s1582_s26, %s1578_s3 }
 0x26a   : > { %p1585_p12 = por %p1584_p11, %p1583_p10 }
 0x26b   : > { %v1365_v32 = vpop.eup %1364 }
 0x26c   : > { %v597_v33 = vpack.c.bf16 %v1365_v32, %v1365_v32  ;;  %v584_v34 = vsel %vm546_vm2, %v1365_v32, 0.0  ;;  %p1586_p13 = pnand %p1585_p12, %p1581_p9 }
 0x26e   : > { %1201 = vmatmul.msk.bf16.vlgmr.msrb.gmra.mxu0 %vm546_vm2, %v597_v33 }
 0x275   : > { %585 = vadd.xlane.f32.xlu0 %v584_v34 }
 0x2b9   : > { %v856_v37 = vpop.permute.xlu2 %855 }
 0x2ba   : > { %v858_v38 = vsub.f32 %v1905_v0, %v856_v37  ;;  %v755_v0 = vmul.f32 1.442695, %v754_v19 }
 0x2bc   : > { %v859_v39 = vmul.f32 1.442695, %v858_v38 }
 0x2bd   : > { %v664_v40 = vpop.permute.xlu0 %663 }
 0x2be   : > { %1366 = vpow2.f32 %v859_v39  ;;  %v666_v41 = vsub.f32 %v1887_v51, %v664_v40 }
 0x2c0   : > { %v667_v42 = vmul.f32 1.442695, %v666_v41 }
 0x2c1   : > { %v881_v43 = vpop.permute.xlu2 %880 }
 0x2c2   : > { %1368 = vpow2.f32 %v667_v42  ;;  %v886_v44 = vsel %vm601_vm5, %v881_v43, 0 }
 0x2c3   : > { %895 = vmatpush.bf16.msra.mxu2 %v886_v44 }
 0x2c4   : > { %v1367_v45 = vpop.eup %1366 }
 0x2c5   : > { %v863_v46 = vsel %vm546_vm2, %v1367_v45, 0.0  ;;  %v876_v62 = vpack.c.bf16 %v1367_v45, %v1367_v45 }
 0x2c6   : > { %864 = vadd.xlane.f32.xlu0 %v863_v46 }
 0x2c7   : > { %v760_v47 = vpop.permute.xlu1 %759 }
 0x2c8   : > { %v1369_v48 = vpop.eup %1368  ;;  %v762_v49 = vsub.f32 %v1896_v58, %v760_v47  ;;  %v572_v58 = vmul.f32 1.442695, %v571_v59 }
 0x2c9   : > { %v671_v50 = vsel %vm546_vm2, %v1369_v48, 0.0  ;;  %v684_v52 = vpack.c.bf16 %v1369_v48, %v1369_v48 }
 0x2ca   : > { %v763_v54 = vmul.f32 1.442695, %v762_v49  ;;  %672 = vadd.xlane.f32.xlu1 %v671_v50 }
 0x2cb   : > { %1203 = vmatmul.msk.bf16.vlgmr.msrb.gmra.mxu2 %vm546_vm2, %v684_v52  ;;  %v1228_v52 = vld [vmem:[#allocation17 + $0x8] sm:$0xff] }
 0x2cc   : > { %1370 = vpow2.f32 %v763_v54  ;;  %983 = vmatpush.bf16.msra.mxu3 %v1228_v52  ;;  %v1227_v54 = vld [vmem:[#allocation17] sm:$0xff] }
 0x2cd   : > { %1372 = vpow2.f32 %v572_v58 }
 0x2ce   : > { %1374 = vpow2.f32 %v659_v63 }
 0x2cf   : > { %v785_v51 = vpop.permute.xlu1 %784  ;;  %1376 = vpow2.f32 %v755_v0 }
 0x2d0   : > { %v790_v55 = vsel %vm601_vm5, %v785_v51, 0  ;;  %1378 = vpow2.f32 %v851_v5  ;;  %984 = vmatpush.bf16.msra.mxu3 %v1227_v54 }
 0x2d1   : > { %799 = vmatpush.bf16.msra.mxu0 %v790_v55 }
 0x2d2   : > { %v1371_v56 = vpop.eup %1370 }
 0x2d3   : > { %v780_v60 = vpack.c.bf16 %v1371_v56, %v1371_v56  ;;  %v767_v61 = vsel %vm546_vm2, %v1371_v56, 0.0  ;;  %v1373_v1 = vpop.eup %1372 }
 0x2d4   : > { %768 = vadd.xlane.f32.xlu2 %v767_v61  ;;  %v583_v4 = vmul.f32 %v1373_v1, %v582_v2  ;;  %v1375_v59 = vpop.eup %1374 }
 0x2d5   : > { %1205 = vmatmul.msk.bf16.vlgmr.msra.gmra.mxu0 %vm546_vm2, %v780_v60  ;;  %v1377_v7 = vpop.eup %1376 }
 0x2d6   : > { %v1379_v11 = vpop.eup %1378 }
 0x2db   : > { %1207 = vmatmul.msk.bf16.vlgmr.msra.gmra.mxu2 %vm546_vm2, %v876_v62 }
 0x2e3   : > { %593 = vperm.xlu1 %1355, %v1373_v1  }
 0x2e8   : > { %v586_v53 = vpop.xlane.xlu0 %585 }
 0x2e9   : > { %v587_v57 = vadd.f32 %v586_v53, %v583_v4  ;;  %v1363_v4 = vld [vmem:[%s2042_s6] ss:$0 sm:$0xff] }
 0x2eb   : > { %589 = vst.msk [vmem:[#allocation6] sm:$0xff] %vm588_vm4, %v587_v57  ;;  %1357 = vset.pattern.permute.xlu1 %v1675_v6  ;;  %v614_v9 = vpop.f32.mrf.mxu0 }
 0x2ec   : > { %776 = vperm.xlu1 %1357, %v1377_v7   ;;  %680 = vperm.xlu2 %1356, %v1375_v59  }
 0x2f2   : > { %v669_v12 = vld [vmem:[#allocation6] sm:$0xff] }
 0x2f3   : > { %v616_v10 = vpop.f32.mrf.mxu0  ;;  %v670_v13 = vmul.f32 %v1375_v59, %v669_v12 }
 0x2f4   : > { %1358 = vset.pattern.permute.xlu2 %v1676_v8 }
 0x2f5   : > { %872 = vperm.xlu2 %1358, %v1379_v11  }
 0x2fd   : > { %1360 = vset.pattern.permute.xlu2 %v1674_v3 }
 0x339   : > { %v865_v3 = vpop.xlane.xlu0 %864 }
 0x33d   : > { %v673_v14 = vpop.xlane.xlu1 %672 }
 0x33e   : > { %v674_v15 = vadd.f32 %v673_v14, %v670_v13 }
 0x340   : > { %676 = vst.msk [vmem:[#allocation6] sm:$0xff] %vm675_vm6, %v674_v15 }
 0x347   : > { %v765_v16 = vld [vmem:[#allocation6] sm:$0xff]  ;;  %v769_v6 = vpop.xlane.xlu2 %768 }
 0x348   : > { %v766_v17 = vmul.f32 %v1377_v7, %v765_v16 }
 0x34a   : > { %v770_v18 = vadd.f32 %v769_v6, %v766_v17 }
 0x34c   : > { %772 = vst.msk [vmem:[#allocation6] sm:$0xff] %vm771_vm7, %v770_v18 }
 0x34e   : > { %v705_v19 = vpop.f32.mrf.mxu2 }
 0x34f   : > { %710 = vrot.lane.b32.xlu0 %v705_v19, %s1677_s11  ;;  %v681_v35 = vpop.permute.xlu2 %680 }
 0x352   : > { %v801_v20 = vpop.f32.mrf.mxu0 }
 0x353   : > { %v861_v21 = vld [vmem:[#allocation6] sm:$0xff] }
 0x354   : > { %v862_v23 = vmul.f32 %v1379_v11, %v861_v21 }
 0x355   : > { %v594_v24 = vpop.permute.xlu1 %593 }
 0x356   : > { %v866_v25 = vadd.f32 %v865_v3, %v862_v23  ;;  %v596_v26 = vmul.f32 %v594_v24, %v590_v22  ;;  %v707_v27 = vpop.f32.mrf.mxu2 }
 0x357   : > { %806 = vrot.lane.b32.xlu0 %v801_v20, %s1678_s21  ;;  %v873_v44 = vpop.permute.xlu2 %872 }
 0x358   : > { %868 = vst.msk [vmem:[#allocation6] sm:$0xff] %vm867_vm8, %v866_v25  ;;  %v618_v28 = vadd.f32 %v614_v9, %v596_v26 }
 0x35a   : > { %619 = vst.msk [vmem:[#allocation7] sm:$0xff] %vm546_vm2, %v618_v28  ;;  %v803_v29 = vpop.f32.mrf.mxu0 }
 0x35e   : > { %v897_v30 = vpop.f32.mrf.mxu2  ;;  %v777_v39 = vpop.permute.xlu1 %776 }
 0x35f   : > { %902 = vrot.lane.b32.xlu1 %v897_v30, %s1679_s18  ;;  %v932_v31 = vld [vmem:[#allocation6] sm:$0xff] }
 0x360   : > { %1380 = vrcp.f32 %v932_v31 }
 0x361   : > { %v677_v34 = vld [vmem:[#allocation7] sm:$0xff] }
 0x362   : > { %v683_v36 = vmul.f32 %v681_v35, %v677_v34 }
 0x366   : > { %v1381_v32 = vpop.eup %1380  ;;  %v899_v33 = vpop.f32.mrf.mxu2 }
 0x367   : > { %937 = vperm.xlu1 %1357, %v1381_v32   ;;  %927 = vperm.xlu2 %1360, %v1381_v32  }
 0x368   : > { %917 = vperm.xlu0 %1359, %v1381_v32  }
 0x36f   : > { %1361 = vset.pattern.permute.xlu2 %v1676_v8 }
 0x370   : > { %947 = vperm.xlu2 %1361, %v1381_v32   ;;  %1362 = vset.pattern.permute.xlu0 %v1676_v8 }
 0x3c1   : > { %v711_v37 = vpop.permute.xlu0 %710  ;;  %v928_v51 = vpop.permute.xlu2 %927 }
 0x3c2   : > { %v713_v38 = vadd.f32 %v711_v37, %v683_v36 }
 0x3c4   : > { %715 = vst.msk [vmem:[#allocation7] sm:$0xff] %vm714_vm9, %v713_v38 }
 0x3c9   : > { %v807_v42 = vpop.permute.xlu0 %806 }
 0x3ca   : > { %v948_v62 = vpop.permute.xlu2 %947 }
 0x3cb   : > { %v773_v40 = vld [vmem:[#allocation7] sm:$0xff] }
 0x3cc   : > { %v779_v41 = vmul.f32 %v777_v39, %v773_v40 }
 0x3ce   : > { %v809_v43 = vadd.f32 %v807_v42, %v779_v41 }
 0x3d0   : > { %811 = vst.msk [vmem:[#allocation7] sm:$0xff] %vm810_vm10, %v809_v43 }
 0x3d1   : > { %v903_v8 = vpop.permute.xlu1 %902 }
 0x3d7   : > { %v869_v45 = vld [vmem:[#allocation7] sm:$0xff] }
 0x3d8   : > { %v875_v46 = vmul.f32 %v873_v44, %v869_v45 }
 0x3d9   : > { %v938_v60 = vpop.permute.xlu1 %937 }
 0x3da   : > { %v905_v47 = vadd.f32 %v903_v8, %v875_v46  ;;  %v918_v49 = vpop.permute.xlu0 %917 }
 0x3dc   : > { %907 = vst.msk [vmem:[#allocation7] sm:$0xff] %vm906_vm11, %v905_v47 }
 0x3e3   : > { %v914_v48 = vld [vmem:[#allocation7] sm:$0xff] }
 0x3e4   : > { %v920_v50 = vmul.f32 %v918_v49, %v914_v48 }
 0x3e6   : > { %921 = vst.msk [vmem:[#allocation7] sm:$0xff] %vm546_vm2, %v920_v50 }
 0x3ed   : > { %v924_v55 = vld [vmem:[#allocation7] sm:$0xff] }
 0x3ee   : > { %v930_v56 = vmul.f32 %v928_v51, %v924_v55 }
 0x3f0   : > { %931 = vst.msk [vmem:[#allocation7] sm:$0xff] %vm714_vm9, %v930_v56 }
 0x3f7   : > { %v934_v61 = vld [vmem:[#allocation7] sm:$0xff] }
 0x3f8   : > { %v940_v58 = vmul.f32 %v938_v60, %v934_v61 }
 0x3fa   : > { %941 = vst.msk [vmem:[#allocation7] sm:$0xff] %vm810_vm10, %v940_v58 }
 0x401   : > { %v944_v63 = vld [vmem:[#allocation7] sm:$0xff] }
 0x402   : > { %v950_v0 = vmul.f32 %v948_v62, %v944_v63 }
 0x404   : > { %951 = vst.msk [vmem:[#allocation7] sm:$0xff] %vm906_vm11, %v950_v0 }
 0x40b   : > { %v952_v1 = vld [vmem:[#allocation7] sm:$0xff] }
 0x40c   : > { %v953_v2 = vpack.c.bf16 %v952_v1, %v952_v1 }
 0x40e   : > { %1216 = vmatmul.msk.bf16.vlgmr.msra.gmra.mxu3 %vm450_vm0, %v953_v2 }
 0x491   : > { %v986_v53 = vpop.f32.mrf.mxu3 }
 0x492   : > { %v987_v57 = vadd.f32 %v1363_v4, %v986_v53 }
 0x494   : > { %990 = vst.msk [vmem:[%s427_s15] sm:$0xff] %vm450_vm0, %v987_v57 }
 0x495   : > { %1589 = shalt.err (!%p1586_p13)
}
 0x496   : > { %1249 = dma.vmem_to_hbm [thread:$0]  (%p1812_p2), %s1006_s23, 128, %s1008_s10, %s992_s27  }
 0x499   : > { %v988_v59 = vpop.f32.mrf.mxu3 }
 0x49a PF: > { %s1019_s2 = sand.u32 1, %s1640_s24   ;;  %p1272_p0 = pnand %p1160_p6, %p1819_p5 }
 0x49b   : > { %s1020_s11 = scalar_lea.sflag [#allocation10], %s1019_s2 }
 0x49c   : > { %p1273_p4 = pneg %p1272_p0 }
 0x49e   : > { %1635 = dma.done.wait (%p1273_p4), %s1020_s11, 128  }
 0x49f   : > { %1637 = vsyncadd (%p1273_p4), %s1020_s11, 4294967168  ;;  %s28_s29 = sadd.s32 1, %s1660_s29   ;;  %s2065_s21 = sld [smem:[#allocation26_spill]] }
 0x4a0   : > { %p25_p7 = scmp.ge.s32.totalorder %s28_s29, 4   ;;  %s2066_s26 = sld [smem:[#allocation29_spill]] }
 0x4a1   : > { %s2067_s27 = sld [smem:[#allocation27_spill]]  ;;  %s2069_s24 = smov %s1644_s25 }
 0x4a2   : > { %s2068_s28 = sld [smem:[#allocation28_spill]]  ;;  %27 = sbr.rel (!%p25_p7) target bundleno = 15 (0xf), region = 130 }
 0x4a5   : > { %s2070_s25 = smov %s2065_s21 }
 0x4a7   :  { %1026 = vsyncpa [#allocation9], 1 }
 0x4a8   :  { %1028 = vsyncpa [#allocation9 + $0x1], 1 }
 0x4a9   :  { %1029 = vsyncpa [#allocation12], 1 }
 0x4aa   :  { %1031 = vsyncpa [#allocation12 + $0x1], 1 }
 0x4ab   :  { %1032 = vsyncpa [#allocation15], 1 }
 0x4ac   :  { %1033 = vsyncpa [#allocation18], 1 }
 0x4ad   :  { %1034 = vsyncpa [#allocation10], 1 }
 0x4ae   :  { %1036 = vsyncpa [#allocation10 + $0x1], 1 }

</bundles_post_ra>
